<compile_context>
chip_gen: v5e
topology: v5e:2x2
jax: 0.10.0
libtpu: 0.0.40
codegen_flags: <defaults>
</compile_context>

<pallas_src>
import functools

import jax
import jax.numpy as jnp
from jax.experimental import pallas as pl
from jax.experimental.pallas import tpu as pltpu


def _resblock_kernel(x_ref, w1_ref, t1_ref, w2_ref, t2_ref, o_ref, slab_ref):
    """Fused basic ResBlock on one batch tile.

    x_ref   : (B, H, W, C)   f32 input tile (B = batch_block)
    w*_ref  : (9*C, C)       bf16 conv weights, BN scale folded in, K ordered (dy, dx, cin)
    t*_ref  : (1, C)         f32 folded BN shift  = (conv_bias - mean) * scale + beta
    o_ref   : (B, H, W, C)   f32 output tile
    slab_ref: (B, H, W, 9*C) f32 VMEM scratch: im2col slab (reused by both convs)
    """
    B, H, W, C = x_ref.shape
    M = B * H * W

    x = x_ref[...]                                            # f32, kept for the residual

    def pack_taps(src):
        """Build the im2col slab for a 3x3 / pad-1 conv from an in-VMEM (B,H,W,C) value.

        Zero-fills the slab (covers the 1-pixel halo) then scatters the 9 shifted taps
        with purely static slices; returns the (M, 9*C) bf16 operand for one MXU dot.
        """
        slab_ref[...] = jnp.zeros(slab_ref.shape, slab_ref.dtype)
        for dy in range(3):
            for dx in range(3):
                k = dy * 3 + dx
                # tap_k[h, w, :] = src[h + dy - 1, w + dx - 1, :], zero where out of range
                oh0, oh1 = max(0, 1 - dy), H - max(0, dy - 1)
                ow0, ow1 = max(0, 1 - dx), W - max(0, dx - 1)
                ih0, iw0 = oh0 + dy - 1, ow0 + dx - 1
                slab_ref[:, oh0:oh1, ow0:ow1, k * C:(k + 1) * C] = (
                    src[:, ih0:ih0 + (oh1 - oh0), iw0:iw0 + (ow1 - ow0), :])
        return slab_ref[...].reshape(M, 9 * C).astype(jnp.bfloat16)

    # ---- conv1 (+ folded BN1 scale) -> shift -> ReLU : single K=9C MXU dot ----
    h1 = jnp.dot(pack_taps(x), w1_ref[...], preferred_element_type=jnp.float32)
    h1 = jnp.maximum(h1 + t1_ref[...], 0.0).reshape(B, H, W, C)

    # ---- conv2 (+ folded BN2 scale) -> shift : single K=9C MXU dot ----
    y2 = jnp.dot(pack_taps(h1), w2_ref[...], preferred_element_type=jnp.float32)
    y2 = (y2 + t2_ref[...]).reshape(B, H, W, C)

    # ---- residual add (exact f32 identity path) + ReLU ----
    o_ref[...] = jnp.maximum(y2 + x, 0.0)


def resblock_forward(x, w1, b1, g1, be1, m1, v1, w2, b2, g2, be2, m2, v2,
                     eps=1e-5, batch_block=1):
    """x: (N, H, W, C) float32, NHWC. Conv weights HWIO (3, 3, C, C)."""
    N, H, W, C = x.shape
    assert N % batch_block == 0, "batch must be divisible by batch_block"

    # Fold conv bias + inference BatchNorm into the weights (scale) and a shift.
    s1 = g1 / jnp.sqrt(v1 + eps)
    s2 = g2 / jnp.sqrt(v2 + eps)
    w1f = (w1 * s1[None, None, None, :]).reshape(9 * C, C).astype(jnp.bfloat16)
    w2f = (w2 * s2[None, None, None, :]).reshape(9 * C, C).astype(jnp.bfloat16)
    t1 = ((b1 - m1) * s1 + be1).reshape(1, C).astype(jnp.float32)
    t2 = ((b2 - m2) * s2 + be2).reshape(1, C).astype(jnp.float32)

    bn = batch_block
    grid = (N // bn,)

    return pl.pallas_call(
        _resblock_kernel,
        out_shape=jax.ShapeDtypeStruct((N, H, W, C), jnp.float32),
        grid=grid,
        in_specs=[
            pl.BlockSpec((bn, H, W, C), lambda i: (i, 0, 0, 0)),   # x tile
            pl.BlockSpec((9 * C, C), lambda i: (0, 0)),            # w1 (resident)
            pl.BlockSpec((1, C), lambda i: (0, 0)),                # t1
            pl.BlockSpec((9 * C, C), lambda i: (0, 0)),            # w2 (resident)
            pl.BlockSpec((1, C), lambda i: (0, 0)),                # t2
        ],
        out_specs=pl.BlockSpec((bn, H, W, C), lambda i: (i, 0, 0, 0)),
        scratch_shapes=[pltpu.VMEM((bn, H, W, 9 * C), jnp.float32)],
        compiler_params=pltpu.CompilerParams(
            dimension_semantics=("parallel",),          # shard batch across v7x's 2 TCs
            vmem_limit_bytes=32 * 1024 * 1024,          # fits v5e/v6e/v7x scoped VMEM
        ),
    )(x, w1f, t1, w2f, t2)


# ---------------- pure-JAX reference (for validation only) ----------------
def _ref_forward(x, w1, b1, g1, be1, m1, v1, w2, b2, g2, be2, m2, v2, eps=1e-5):
    def conv_bn(h, w, b, g, be, m, v, act):
        y = jax.lax.conv_general_dilated(
            h, w, window_strides=(1, 1), padding='SAME',
            dimension_numbers=('NHWC', 'HWIO', 'NHWC')) + b
        y = (y - m) / jnp.sqrt(v + eps) * g + be
        return jnp.maximum(y, 0.0) if act else y

    identity = x
    h = conv_bn(x, w1, b1, g1, be1, m1, v1, act=True)
    h = conv_bn(h, w2, b2, g2, be2, m2, v2, act=False)
    return jnp.maximum(h + identity, 0.0)


if __name__ == "__main__":
    key = jax.random.PRNGKey(0)
    N, H, W, C = 2, 8, 8, 8   # small shapes; basic block => in_channels == out_channels

    ks = jax.random.split(key, 11)
    x = jax.random.normal(ks[0], (N, H, W, C), jnp.float32)

    # Conv weights in HWIO = (3, 3, Cin, Cout), deterministic init.
    w1 = jax.random.normal(ks[1], (3, 3, C, C), jnp.float32) * 0.1
    b1 = jax.random.normal(ks[2], (C,), jnp.float32) * 0.1
    w2 = jax.random.normal(ks[3], (3, 3, C, C), jnp.float32) * 0.1
    b2 = jax.random.normal(ks[4], (C,), jnp.float32) * 0.1

    # BatchNorm params (inference mode): affine + running stats.
    g1 = 1.0 + 0.1 * jax.random.normal(ks[5], (C,), jnp.float32)
    be1 = 0.1 * jax.random.normal(ks[6], (C,), jnp.float32)
    m1 = 0.05 * jax.random.normal(ks[7], (C,), jnp.float32)
    v1 = 1.0 + 0.1 * jax.nn.softplus(jax.random.normal(ks[8], (C,), jnp.float32))
    g2 = 1.0 + 0.1 * jax.random.normal(ks[9], (C,), jnp.float32)
    be2 = 0.1 * jax.random.normal(ks[10], (C,), jnp.float32)
    m2 = jnp.zeros((C,), jnp.float32)
    v2 = jnp.ones((C,), jnp.float32)

    out = resblock_forward(x, w1, b1, g1, be1, m1, v1, w2, b2, g2, be2, m2, v2)
    out = jax.block_until_ready(out)

    ref = _ref_forward(x, w1, b1, g1, be1, m1, v1, w2, b2, g2, be2, m2, v2)
    assert out.shape == (N, H, W, C)
    # bf16 MXU dots (f32 accumulation) => loosened tolerance vs the f32 reference.
    max_err = jnp.max(jnp.abs(out - ref))
    assert jnp.allclose(out, ref, atol=5e-2, rtol=5e-2), f"max abs err {max_err}"

    print("KERNEL_OK")
</pallas_src>

<mosaic_0001>
module attributes {stable_mosaic.version = 11 : i64} {
  func.func @_resblock_kernel(%arg0: i32, %arg1: memref<1x8x8x8xf32, #tpu.memory_space<vmem>>, %arg2: memref<72x8xbf16, #tpu.memory_space<vmem>>, %arg3: memref<1x8xf32, #tpu.memory_space<vmem>>, %arg4: memref<72x8xbf16, #tpu.memory_space<vmem>>, %arg5: memref<1x8xf32, #tpu.memory_space<vmem>>, %arg6: memref<1x8x8x8xf32, #tpu.memory_space<vmem>>, %arg7: memref<1x8x8x72xf32, #tpu.memory_space<vmem>>) attributes {dimension_semantics = [#tpu.dimension_semantics<parallel>], iteration_bounds = array<i64: 2>, scalar_prefetch = 0 : i64, scratch_operands = 1 : i64, tpu.core_type = #tpu.core_type<tc>, window_params = [{transform_indices = @transform_0, window_bounds = array<i64: 1, 8, 8, 8>}, {pipeline_mode = #tpu.pipeline_mode<synchronous>, transform_indices = @transform_1, window_bounds = array<i64: 72, 8>}, {pipeline_mode = #tpu.pipeline_mode<synchronous>, transform_indices = @transform_2, window_bounds = array<i64: 1, 8>}, {pipeline_mode = #tpu.pipeline_mode<synchronous>, transform_indices = @transform_3, window_bounds = array<i64: 72, 8>}, {pipeline_mode = #tpu.pipeline_mode<synchronous>, transform_indices = @transform_4, window_bounds = array<i64: 1, 8>}, {transform_indices = @transform_5, window_bounds = array<i64: 1, 8, 8, 8>}]} {
    %c0 = arith.constant 0 : index
    %c0_0 = arith.constant 0 : index
    %c0_1 = arith.constant 0 : index
    %c0_2 = arith.constant 0 : index
    %0 = vector.load %arg1[%c0, %c0_0, %c0_1, %c0_2] : memref<1x8x8x8xf32, #tpu.memory_space<vmem>>, vector<1x8x8x8xf32>
    %cst = arith.constant 0.000000e+00 : f32
    %1 = vector.broadcast %cst : f32 to vector<1x8x8x72xf32>
    %c0_3 = arith.constant 0 : index
    %c0_4 = arith.constant 0 : index
    %c0_5 = arith.constant 0 : index
    %c0_6 = arith.constant 0 : index
    %2 = vector.load %arg7[%c0_3, %c0_4, %c0_5, %c0_6] : memref<1x8x8x72xf32, #tpu.memory_space<vmem>>, vector<1x8x8x72xf32>
    tpu.vector_store %arg7[%c0_3, %c0_4, %c0_5, %c0_6], %1 {strides = array<i32>} : memref<1x8x8x72xf32, #tpu.memory_space<vmem>>, vector<1x8x8x72xf32>,
    %3 = vector.extract_strided_slice %0 {offsets = [0, 0, 0, 0], sizes = [1, 7, 7, 8], strides = [1, 1, 1, 1]} : vector<1x8x8x8xf32> to vector<1x7x7x8xf32>
    %c0_7 = arith.constant 0 : index
    %c1 = arith.constant 1 : index
    %c1_8 = arith.constant 1 : index
    %c0_9 = arith.constant 0 : index
    %4 = vector.load %arg7[%c0_7, %c1, %c1_8, %c0_9] : memref<1x8x8x72xf32, #tpu.memory_space<vmem>>, vector<1x7x7x8xf32>
    tpu.vector_store %arg7[%c0_7, %c1, %c1_8, %c0_9], %3 {strides = array<i32>} : memref<1x8x8x72xf32, #tpu.memory_space<vmem>>, vector<1x7x7x8xf32>,
    %5 = vector.extract_strided_slice %0 {offsets = [0, 0, 0, 0], sizes = [1, 7, 8, 8], strides = [1, 1, 1, 1]} : vector<1x8x8x8xf32> to vector<1x7x8x8xf32>
    %c0_10 = arith.constant 0 : index
    %c1_11 = arith.constant 1 : index
    %c0_12 = arith.constant 0 : index
    %c8 = arith.constant 8 : index
    %6 = vector.load %arg7[%c0_10, %c1_11, %c0_12, %c8] : memref<1x8x8x72xf32, #tpu.memory_space<vmem>>, vector<1x7x8x8xf32>
    tpu.vector_store %arg7[%c0_10, %c1_11, %c0_12, %c8], %5 {strides = array<i32>} : memref<1x8x8x72xf32, #tpu.memory_space<vmem>>, vector<1x7x8x8xf32>,
    %7 = vector.extract_strided_slice %0 {offsets = [0, 0, 1, 0], sizes = [1, 7, 7, 8], strides = [1, 1, 1, 1]} : vector<1x8x8x8xf32> to vector<1x7x7x8xf32>
    %c0_13 = arith.constant 0 : index
    %c1_14 = arith.constant 1 : index
    %c0_15 = arith.constant 0 : index
    %c16 = arith.constant 16 : index
    %8 = vector.load %arg7[%c0_13, %c1_14, %c0_15, %c16] : memref<1x8x8x72xf32, #tpu.memory_space<vmem>>, vector<1x7x7x8xf32>
    tpu.vector_store %arg7[%c0_13, %c1_14, %c0_15, %c16], %7 {strides = array<i32>} : memref<1x8x8x72xf32, #tpu.memory_space<vmem>>, vector<1x7x7x8xf32>,
    %9 = vector.extract_strided_slice %0 {offsets = [0, 0, 0, 0], sizes = [1, 8, 7, 8], strides = [1, 1, 1, 1]} : vector<1x8x8x8xf32> to vector<1x8x7x8xf32>
    %c0_16 = arith.constant 0 : index
    %c0_17 = arith.constant 0 : index
    %c1_18 = arith.constant 1 : index
    %c24 = arith.constant 24 : index
    %10 = vector.load %arg7[%c0_16, %c0_17, %c1_18, %c24] : memref<1x8x8x72xf32, #tpu.memory_space<vmem>>, vector<1x8x7x8xf32>
    tpu.vector_store %arg7[%c0_16, %c0_17, %c1_18, %c24], %9 {strides = array<i32>} : memref<1x8x8x72xf32, #tpu.memory_space<vmem>>, vector<1x8x7x8xf32>,
    %c0_19 = arith.constant 0 : index
    %c0_20 = arith.constant 0 : index
    %c0_21 = arith.constant 0 : index
    %c32 = arith.constant 32 : index
    %11 = vector.load %arg7[%c0_19, %c0_20, %c0_21, %c32] : memref<1x8x8x72xf32, #tpu.memory_space<vmem>>, vector<1x8x8x8xf32>
    tpu.vector_store %arg7[%c0_19, %c0_20, %c0_21, %c32], %0 {strides = array<i32>} : memref<1x8x8x72xf32, #tpu.memory_space<vmem>>, vector<1x8x8x8xf32>,
    %12 = vector.extract_strided_slice %0 {offsets = [0, 0, 1, 0], sizes = [1, 8, 7, 8], strides = [1, 1, 1, 1]} : vector<1x8x8x8xf32> to vector<1x8x7x8xf32>
    %c0_22 = arith.constant 0 : index
    %c0_23 = arith.constant 0 : index
    %c0_24 = arith.constant 0 : index
    %c40 = arith.constant 40 : index
    %13 = vector.load %arg7[%c0_22, %c0_23, %c0_24, %c40] : memref<1x8x8x72xf32, #tpu.memory_space<vmem>>, vector<1x8x7x8xf32>
    tpu.vector_store %arg7[%c0_22, %c0_23, %c0_24, %c40], %12 {strides = array<i32>} : memref<1x8x8x72xf32, #tpu.memory_space<vmem>>, vector<1x8x7x8xf32>,
    %14 = vector.extract_strided_slice %0 {offsets = [0, 1, 0, 0], sizes = [1, 7, 7, 8], strides = [1, 1, 1, 1]} : vector<1x8x8x8xf32> to vector<1x7x7x8xf32>
    %c0_25 = arith.constant 0 : index
    %c0_26 = arith.constant 0 : index
    %c1_27 = arith.constant 1 : index
    %c48 = arith.constant 48 : index
    %15 = vector.load %arg7[%c0_25, %c0_26, %c1_27, %c48] : memref<1x8x8x72xf32, #tpu.memory_space<vmem>>, vector<1x7x7x8xf32>
    tpu.vector_store %arg7[%c0_25, %c0_26, %c1_27, %c48], %14 {strides = array<i32>} : memref<1x8x8x72xf32, #tpu.memory_space<vmem>>, vector<1x7x7x8xf32>,
    %16 = vector.extract_strided_slice %0 {offsets = [0, 1, 0, 0], sizes = [1, 7, 8, 8], strides = [1, 1, 1, 1]} : vector<1x8x8x8xf32> to vector<1x7x8x8xf32>
    %c0_28 = arith.constant 0 : index
    %c0_29 = arith.constant 0 : index
    %c0_30 = arith.constant 0 : index
    %c56 = arith.constant 56 : index
    %17 = vector.load %arg7[%c0_28, %c0_29, %c0_30, %c56] : memref<1x8x8x72xf32, #tpu.memory_space<vmem>>, vector<1x7x8x8xf32>
    tpu.vector_store %arg7[%c0_28, %c0_29, %c0_30, %c56], %16 {strides = array<i32>} : memref<1x8x8x72xf32, #tpu.memory_space<vmem>>, vector<1x7x8x8xf32>,
    %18 = vector.extract_strided_slice %0 {offsets = [0, 1, 1, 0], sizes = [1, 7, 7, 8], strides = [1, 1, 1, 1]} : vector<1x8x8x8xf32> to vector<1x7x7x8xf32>
    %c0_31 = arith.constant 0 : index
    %c0_32 = arith.constant 0 : index
    %c0_33 = arith.constant 0 : index
    %c64 = arith.constant 64 : index
    %19 = vector.load %arg7[%c0_31, %c0_32, %c0_33, %c64] : memref<1x8x8x72xf32, #tpu.memory_space<vmem>>, vector<1x7x7x8xf32>
    tpu.vector_store %arg7[%c0_31, %c0_32, %c0_33, %c64], %18 {strides = array<i32>} : memref<1x8x8x72xf32, #tpu.memory_space<vmem>>, vector<1x7x7x8xf32>,
    %c0_34 = arith.constant 0 : index
    %c0_35 = arith.constant 0 : index
    %c0_36 = arith.constant 0 : index
    %c0_37 = arith.constant 0 : index
    %20 = vector.load %arg7[%c0_34, %c0_35, %c0_36, %c0_37] : memref<1x8x8x72xf32, #tpu.memory_space<vmem>>, vector<1x8x8x72xf32>
    %21 = vector.shape_cast %20 : vector<1x8x8x72xf32> to vector<64x72xf32>
    %22 = arith.truncf %21 : vector<64x72xf32> to vector<64x72xbf16>
    %c0_38 = arith.constant 0 : index
    %c0_39 = arith.constant 0 : index
    %23 = vector.load %arg2[%c0_38, %c0_39] : memref<72x8xbf16, #tpu.memory_space<vmem>>, vector<72x8xbf16>
    %cst_40 = arith.constant dense<0.000000e+00> : vector<64x8xf32>
    %24 = tpu.matmul %22, %23, %cst_40 {dimension_numbers = #tpu.dot_dimension_numbers<[1], [0], [0], [1], [0, 0, 1, 1], [], []>} : vector<64x72xbf16>, vector<72x8xbf16>, vector<64x8xf32> -> vector<64x8xf32>
    %c0_41 = arith.constant 0 : index
    %c0_42 = arith.constant 0 : index
    %25 = vector.load %arg3[%c0_41, %c0_42] : memref<1x8xf32, #tpu.memory_space<vmem>>, vector<1x8xf32>
    %26 = vector.broadcast %25 : vector<1x8xf32> to vector<64x8xf32>
    %27 = arith.addf %24, %26 : vector<64x8xf32>
    %cst_43 = arith.constant 0.000000e+00 : f32
    %28 = vector.broadcast %cst_43 : f32 to vector<64x8xf32>
    %29 = arith.maximumf %27, %28 : vector<64x8xf32>
    %30 = vector.shape_cast %29 : vector<64x8xf32> to vector<1x8x8x8xf32>
    %cst_44 = arith.constant 0.000000e+00 : f32
    %31 = vector.broadcast %cst_44 : f32 to vector<1x8x8x72xf32>
    %c0_45 = arith.constant 0 : index
    %c0_46 = arith.constant 0 : index
    %c0_47 = arith.constant 0 : index
    %c0_48 = arith.constant 0 : index
    %32 = vector.load %arg7[%c0_45, %c0_46, %c0_47, %c0_48] : memref<1x8x8x72xf32, #tpu.memory_space<vmem>>, vector<1x8x8x72xf32>
    tpu.vector_store %arg7[%c0_45, %c0_46, %c0_47, %c0_48], %31 {strides = array<i32>} : memref<1x8x8x72xf32, #tpu.memory_space<vmem>>, vector<1x8x8x72xf32>,
    %33 = vector.extract_strided_slice %30 {offsets = [0, 0, 0, 0], sizes = [1, 7, 7, 8], strides = [1, 1, 1, 1]} : vector<1x8x8x8xf32> to vector<1x7x7x8xf32>
    %c0_49 = arith.constant 0 : index
    %c1_50 = arith.constant 1 : index
    %c1_51 = arith.constant 1 : index
    %c0_52 = arith.constant 0 : index
    %34 = vector.load %arg7[%c0_49, %c1_50, %c1_51, %c0_52] : memref<1x8x8x72xf32, #tpu.memory_space<vmem>>, vector<1x7x7x8xf32>
    tpu.vector_store %arg7[%c0_49, %c1_50, %c1_51, %c0_52], %33 {strides = array<i32>} : memref<1x8x8x72xf32, #tpu.memory_space<vmem>>, vector<1x7x7x8xf32>,
    %35 = vector.extract_strided_slice %30 {offsets = [0, 0, 0, 0], sizes = [1, 7, 8, 8], strides = [1, 1, 1, 1]} : vector<1x8x8x8xf32> to vector<1x7x8x8xf32>
    %c0_53 = arith.constant 0 : index
    %c1_54 = arith.constant 1 : index
    %c0_55 = arith.constant 0 : index
    %c8_56 = arith.constant 8 : index
    %36 = vector.load %arg7[%c0_53, %c1_54, %c0_55, %c8_56] : memref<1x8x8x72xf32, #tpu.memory_space<vmem>>, vector<1x7x8x8xf32>
    tpu.vector_store %arg7[%c0_53, %c1_54, %c0_55, %c8_56], %35 {strides = array<i32>} : memref<1x8x8x72xf32, #tpu.memory_space<vmem>>, vector<1x7x8x8xf32>,
    %37 = vector.extract_strided_slice %30 {offsets = [0, 0, 1, 0], sizes = [1, 7, 7, 8], strides = [1, 1, 1, 1]} : vector<1x8x8x8xf32> to vector<1x7x7x8xf32>
    %c0_57 = arith.constant 0 : index
    %c1_58 = arith.constant 1 : index
    %c0_59 = arith.constant 0 : index
    %c16_60 = arith.constant 16 : index
    %38 = vector.load %arg7[%c0_57, %c1_58, %c0_59, %c16_60] : memref<1x8x8x72xf32, #tpu.memory_space<vmem>>, vector<1x7x7x8xf32>
    tpu.vector_store %arg7[%c0_57, %c1_58, %c0_59, %c16_60], %37 {strides = array<i32>} : memref<1x8x8x72xf32, #tpu.memory_space<vmem>>, vector<1x7x7x8xf32>,
    %39 = vector.extract_strided_slice %30 {offsets = [0, 0, 0, 0], sizes = [1, 8, 7, 8], strides = [1, 1, 1, 1]} : vector<1x8x8x8xf32> to vector<1x8x7x8xf32>
    %c0_61 = arith.constant 0 : index
    %c0_62 = arith.constant 0 : index
    %c1_63 = arith.constant 1 : index
    %c24_64 = arith.constant 24 : index
    %40 = vector.load %arg7[%c0_61, %c0_62, %c1_63, %c24_64] : memref<1x8x8x72xf32, #tpu.memory_space<vmem>>, vector<1x8x7x8xf32>
    tpu.vector_store %arg7[%c0_61, %c0_62, %c1_63, %c24_64], %39 {strides = array<i32>} : memref<1x8x8x72xf32, #tpu.memory_space<vmem>>, vector<1x8x7x8xf32>,
    %c0_65 = arith.constant 0 : index
    %c0_66 = arith.constant 0 : index
    %c0_67 = arith.constant 0 : index
    %c32_68 = arith.constant 32 : index
    %41 = vector.load %arg7[%c0_65, %c0_66, %c0_67, %c32_68] : memref<1x8x8x72xf32, #tpu.memory_space<vmem>>, vector<1x8x8x8xf32>
    tpu.vector_store %arg7[%c0_65, %c0_66, %c0_67, %c32_68], %30 {strides = array<i32>} : memref<1x8x8x72xf32, #tpu.memory_space<vmem>>, vector<1x8x8x8xf32>,
    %42 = vector.extract_strided_slice %30 {offsets = [0, 0, 1, 0], sizes = [1, 8, 7, 8], strides = [1, 1, 1, 1]} : vector<1x8x8x8xf32> to vector<1x8x7x8xf32>
    %c0_69 = arith.constant 0 : index
    %c0_70 = arith.constant 0 : index
    %c0_71 = arith.constant 0 : index
    %c40_72 = arith.constant 40 : index
    %43 = vector.load %arg7[%c0_69, %c0_70, %c0_71, %c40_72] : memref<1x8x8x72xf32, #tpu.memory_space<vmem>>, vector<1x8x7x8xf32>
    tpu.vector_store %arg7[%c0_69, %c0_70, %c0_71, %c40_72], %42 {strides = array<i32>} : memref<1x8x8x72xf32, #tpu.memory_space<vmem>>, vector<1x8x7x8xf32>,
    %44 = vector.extract_strided_slice %30 {offsets = [0, 1, 0, 0], sizes = [1, 7, 7, 8], strides = [1, 1, 1, 1]} : vector<1x8x8x8xf32> to vector<1x7x7x8xf32>
    %c0_73 = arith.constant 0 : index
    %c0_74 = arith.constant 0 : index
    %c1_75 = arith.constant 1 : index
    %c48_76 = arith.constant 48 : index
    %45 = vector.load %arg7[%c0_73, %c0_74, %c1_75, %c48_76] : memref<1x8x8x72xf32, #tpu.memory_space<vmem>>, vector<1x7x7x8xf32>
    tpu.vector_store %arg7[%c0_73, %c0_74, %c1_75, %c48_76], %44 {strides = array<i32>} : memref<1x8x8x72xf32, #tpu.memory_space<vmem>>, vector<1x7x7x8xf32>,
    %46 = vector.extract_strided_slice %30 {offsets = [0, 1, 0, 0], sizes = [1, 7, 8, 8], strides = [1, 1, 1, 1]} : vector<1x8x8x8xf32> to vector<1x7x8x8xf32>
    %c0_77 = arith.constant 0 : index
    %c0_78 = arith.constant 0 : index
    %c0_79 = arith.constant 0 : index
    %c56_80 = arith.constant 56 : index
    %47 = vector.load %arg7[%c0_77, %c0_78, %c0_79, %c56_80] : memref<1x8x8x72xf32, #tpu.memory_space<vmem>>, vector<1x7x8x8xf32>
    tpu.vector_store %arg7[%c0_77, %c0_78, %c0_79, %c56_80], %46 {strides = array<i32>} : memref<1x8x8x72xf32, #tpu.memory_space<vmem>>, vector<1x7x8x8xf32>,
    %48 = vector.extract_strided_slice %30 {offsets = [0, 1, 1, 0], sizes = [1, 7, 7, 8], strides = [1, 1, 1, 1]} : vector<1x8x8x8xf32> to vector<1x7x7x8xf32>
    %c0_81 = arith.constant 0 : index
    %c0_82 = arith.constant 0 : index
    %c0_83 = arith.constant 0 : index
    %c64_84 = arith.constant 64 : index
    %49 = vector.load %arg7[%c0_81, %c0_82, %c0_83, %c64_84] : memref<1x8x8x72xf32, #tpu.memory_space<vmem>>, vector<1x7x7x8xf32>
    tpu.vector_store %arg7[%c0_81, %c0_82, %c0_83, %c64_84], %48 {strides = array<i32>} : memref<1x8x8x72xf32, #tpu.memory_space<vmem>>, vector<1x7x7x8xf32>,
    %c0_85 = arith.constant 0 : index
    %c0_86 = arith.constant 0 : index
    %c0_87 = arith.constant 0 : index
    %c0_88 = arith.constant 0 : index
    %50 = vector.load %arg7[%c0_85, %c0_86, %c0_87, %c0_88] : memref<1x8x8x72xf32, #tpu.memory_space<vmem>>, vector<1x8x8x72xf32>
    %51 = vector.shape_cast %50 : vector<1x8x8x72xf32> to vector<64x72xf32>
    %52 = arith.truncf %51 : vector<64x72xf32> to vector<64x72xbf16>
    %c0_89 = arith.constant 0 : index
    %c0_90 = arith.constant 0 : index
    %53 = vector.load %arg4[%c0_89, %c0_90] : memref<72x8xbf16, #tpu.memory_space<vmem>>, vector<72x8xbf16>
    %cst_91 = arith.constant dense<0.000000e+00> : vector<64x8xf32>
    %54 = tpu.matmul %52, %53, %cst_91 {dimension_numbers = #tpu.dot_dimension_numbers<[1], [0], [0], [1], [0, 0, 1, 1], [], []>} : vector<64x72xbf16>, vector<72x8xbf16>, vector<64x8xf32> -> vector<64x8xf32>
    %c0_92 = arith.constant 0 : index
    %c0_93 = arith.constant 0 : index
    %55 = vector.load %arg5[%c0_92, %c0_93] : memref<1x8xf32, #tpu.memory_space<vmem>>, vector<1x8xf32>
    %56 = vector.broadcast %55 : vector<1x8xf32> to vector<64x8xf32>
    %57 = arith.addf %54, %56 : vector<64x8xf32>
    %58 = vector.shape_cast %57 : vector<64x8xf32> to vector<1x8x8x8xf32>
    %59 = arith.addf %58, %0 : vector<1x8x8x8xf32>
    %cst_94 = arith.constant 0.000000e+00 : f32
    %60 = vector.broadcast %cst_94 : f32 to vector<1x8x8x8xf32>
    %61 = arith.maximumf %59, %60 : vector<1x8x8x8xf32>
    %c0_95 = arith.constant 0 : index
    %c0_96 = arith.constant 0 : index
    %c0_97 = arith.constant 0 : index
    %c0_98 = arith.constant 0 : index
    %62 = vector.load %arg6[%c0_95, %c0_96, %c0_97, %c0_98] : memref<1x8x8x8xf32, #tpu.memory_space<vmem>>, vector<1x8x8x8xf32>
    tpu.vector_store %arg6[%c0_95, %c0_96, %c0_97, %c0_98], %61 {strides = array<i32>} : memref<1x8x8x8xf32, #tpu.memory_space<vmem>>, vector<1x8x8x8xf32>,
    return
  }
  func.func @transform_0(%arg0: i32) -> (i32, i32, i32, i32) {
    %c0_i32 = arith.constant 0 : i32
    %c0_i32_0 = arith.constant 0 : i32
    %c0_i32_1 = arith.constant 0 : i32
    %c0_i32_2 = arith.constant 0 : i32
    return %arg0, %c0_i32, %c0_i32_0, %c0_i32_1 : i32, i32, i32, i32
  }
  func.func @transform_1(%arg0: i32) -> (i32, i32) {
    %c0_i32 = arith.constant 0 : i32
    %c0_i32_0 = arith.constant 0 : i32
    %c0_i32_1 = arith.constant 0 : i32
    return %c0_i32, %c0_i32_0 : i32, i32
  }
  func.func @transform_2(%arg0: i32) -> (i32, i32) {
    %c0_i32 = arith.constant 0 : i32
    %c0_i32_0 = arith.constant 0 : i32
    %c0_i32_1 = arith.constant 0 : i32
    return %c0_i32, %c0_i32_0 : i32, i32
  }
  func.func @transform_3(%arg0: i32) -> (i32, i32) {
    %c0_i32 = arith.constant 0 : i32
    %c0_i32_0 = arith.constant 0 : i32
    %c0_i32_1 = arith.constant 0 : i32
    return %c0_i32, %c0_i32_0 : i32, i32
  }
  func.func @transform_4(%arg0: i32) -> (i32, i32) {
    %c0_i32 = arith.constant 0 : i32
    %c0_i32_0 = arith.constant 0 : i32
    %c0_i32_1 = arith.constant 0 : i32
    return %c0_i32, %c0_i32_0 : i32, i32
  }
  func.func @transform_5(%arg0: i32) -> (i32, i32, i32, i32) {
    %c0_i32 = arith.constant 0 : i32
    %c0_i32_0 = arith.constant 0 : i32
    %c0_i32_1 = arith.constant 0 : i32
    %c0_i32_2 = arith.constant 0 : i32
    return %arg0, %c0_i32, %c0_i32_0, %c0_i32_1 : i32, i32, i32, i32
  }
}

</mosaic_0001>

<bundles_post_ra>
// kernel: tpu_custom_call.1
= control target key start
LH: loop header
LB: loop body
LE: loop exit
PB: predicated region body
PF: predicated region fallthrough
CT: control target
= control target key end

     0   :  { %10 = vsyncpa [#allocation4], 0  ;;  %s1995_s0 = inlined_call_operand.hbm [shape: f32[2,8,8,8], index: 0, kind: input, shape index: {}]   ;;  %s1996_s1 = inlined_call_operand.vmem [shape: bf16[72,8], index: 1, kind: input, shape index: {}]   ;;  %s1997_s2 = inlined_call_operand.vmem [shape: f32[1,8], index: 2, kind: input, shape index: {}]   ;;  %s1998_s3 = inlined_call_operand.vmem [shape: bf16[72,8], index: 3, kind: input, shape index: {}]   ;;  %s1999_s4 = inlined_call_operand.vmem [shape: f32[1,8], index: 4, kind: input, shape index: {}]   ;;  %s2000_s5 = inlined_call_operand.hbm [shape: f32[2,8,8,8], index: 5, kind: output, shape index: {}]  }
   0x1   :  { %12 = vsyncpa [#allocation4 + $0x1], 0 }
   0x2   :  { %13 = vsyncpa [#allocation5], 0 }
   0x3   :  { %15 = vsyncpa [#allocation5 + $0x1], 0  ;;  %s1372_s18 = smov 0   ;;  %s1374_s19 = smov 0  }
   0x4   :  { %s1376_s20 = smov 0   ;;  %s1378_s21 = smov 0  }
   0x5 LB: > { %s1393_s22 = sadd.s32 4294967295, %s1328_s21   ;;  %s1098_s23 = sadd.s32 4294967294, %s1328_s21   ;;  %s1328_s21 = sphi %s1378_s21, %s2010_s21   ;;  %s1324_s20 = sphi %s1376_s20, %s2009_s20   ;;  %s1320_s19 = sphi %s1374_s19, %s2008_s19   ;;  %s1316_s18 = sphi %s1372_s18, %s2007_s18  }
   0x6   : > { %s1397_s24 = sadd.s32 1, %s1328_s21   ;;  %s28_s25 = sadd.s32 1, %s1324_s20 }
   0x7   : > { %s25_s26 = ssub.s32 %s1328_s21, %s1397_s24  ;;  %p35_p0 = scmp.ne.s32.totalorder %s1324_s20, %s1320_s19 }
   0x8   : > { %p26_p1 = scmp.eq.s32.totalorder %s25_s26, 0  ;;  %p36_p2 = scmp.eq.s32.totalorder %s1328_s21, 0 }
   0x9   : > { %p41_p3 = scmp.ne.s32.totalorder %s1320_s19, %s1316_s18  ;;  %p42_p4 = scmp.eq.s32.totalorder %s1393_s22, 0 }
   0xa   : > { %s1409_s27 = scalar_select %p26_p1, %s1324_s20, %s28_s25  }
   0xb   : > { %p1411_p5 = por %p36_p2, %p35_p0  ;;  %p1415_p6 = por %p42_p4, %p41_p3 }
   0xc   : > { %p149_p7 = scmp.eq.s32.totalorder %s1393_s22, 1  ;;  %p155_p8 = scmp.eq.s32.totalorder %s1098_s23, 1 }
   0xd   : > { %p1184_p10 = scmp.lt.s32.totalorder %s1328_s21, 2  ;;  %s187_s7 = sand.u32 1, %s1324_s20  }
   0xe   : > { %p1422_p11 = por %p149_p7, %p35_p0  ;;  %p1426_p12 = por %p155_p8, %p41_p3 }
   0xf   : > { %s1152_s8 = sshll.u32 %s1328_s21, 6  ;;  %s1101_s9 = sshll.u32 %s187_s7, 6 }
  0x10   : > { %s196_s12 = scalar_lea.hbm %s1995_s0, %s1152_s8  ;;  %s191_s14 = scalar_lea.vmem [#allocation3], %s1101_s9 }
  0x11   : > { %s197_s13 = sshll.u32 %s196_s12, 4  ;;  %s199_s15 = sshll.u32 %s191_s14, 4  ;;  %s198_s13 = int_to_ptr.hbm [resolvable:$true] %s197_s13  ;;  %s200_s15 = int_to_ptr.vmem [resolvable:$true] %s199_s15 }
  0x12   : > { %p1437_p13 = pnand %p1184_p10, %p1411_p5  ;;  %p1104_p0 = scmp.ge.s32.totalorder %s1328_s21, 1 }
  0x13   : > { %p207_p1 = scmp.lt.s32.totalorder %s1328_s21, 3  ;;  %s188_s17 = scalar_lea.sflag [#allocation4], %s187_s7 }
  0x14   : > { %s1232_s23 = sshra.s32 %s198_s13, 4  ;;  %p1236_p3 = pneg %p1437_p13  ;;  %s1233_s23 = int_to_ptr.hbm [resolvable:$true] %s1232_s23 }
  0x15   : > { %s1234_s25 = scalar_lea.hbm %s1233_s23, 64  ;;  %s1239_s28 = scalar_lea.hbm %s1995_s0, 128 }
  0x16   : > { %p1235_p2 = scmp.ne.s32.totalorder %s1233_s23, %s1234_s25  ;;  %p1240_p5 = scmp.lt.s32.totalorder %s1233_s23, %s1995_s0 }
  0x17   : > { %p1241_p8 = scmp.lt.s32.totalorder %s1239_s28, %s1234_s25 }
  0x18   : > { %p1237_p4 = pnand %p1236_p3, %p1235_p2 }
  0x19   : > { %p1242_p10 = por %p1241_p8, %p1240_p5 }
  0x1a   : > { %p1238_p7 = pneg %p1237_p4 }
  0x1c   : > { %p1243_p9 = pnand %p1242_p10, %p1238_p7 }
  0x1e   : > { %1246 = shalt.err (!%p1243_p9)
}
  0x1f   : > { %s1330_s7 = smov 128   ;;  %s1331_s11 = smov 8  }
  0x20   : > { %1179 = dma.hbm_to_vmem [thread:$0]  (!%p1437_p13), %s198_s13, 1024, %s200_s15, %s188_s17, %s1330_s7, %s1330_s7, %s1331_s11  }
  0x21   : > { %p208_p2 = pnand %p1104_p0, %p207_p1 }
  0x22   : > { %s1458_s12 = sand.u32 (!%p208_p2), 1, %s1320_s19  }
  0x23   : > { %211 = sbr.rel (%p208_p2) target bundleno = 806 (0x326), region = 40  ;;  %s1105_s14 = sshll.u32 (!%p208_p2), %s1458_s12, 6 }
  0x24   : > { %s214_s23 = scalar_lea.sflag (!%p208_p2), [#allocation4], %s1458_s12  ;;  %s1464_s25 = scalar_lea.vmem (!%p208_p2), [#allocation3], %s1105_s14 }
  0x28   : > { %1307 = dma.done.wait (%p1415_p6), %s214_s23, 1024  }
  0x29   : > { %1309 = vsyncadd (%p1415_p6), %s214_s23, 4294966272  ;;  %v1471_v0 = vld [vmem:[%s1464_s25] sm:$0xff]  ;;  %s1332_s13 = smov 24   ;;  %s1333_s15 = smov 8   ;;  %v1480_v1 = vld [vmem:[%s1464_s25 + $0x8] sm:$0xff]  ;;  %vm254_vm0 = vcmask 588800  }
  0x2a   : > { %338 = vrot.lane.b32.xlu1 %v1471_v0, %s1332_s13  ;;  %279 = vrot.lane.b32.xlu0 %v1471_v0, %s1333_s15  ;;  %s1334_s16 = smov 32   ;;  %s1335_s29 = smov 16   ;;  %v1495_v2 = vld [vmem:[%s1464_s25 + $0x10] sm:$0xff]  ;;  %v1504_v3 = vld [vmem:[%s1464_s25 + $0x20] sm:$0xff]  ;;  %v1340_v7 = vmov 0.0   ;;  %vm264_vm1 = vcmask 63488  }
  0x2b   : > { %371 = vrot.lane.b32.xlu2 %v1471_v0, %s1334_s16  ;;  %s1336_s17 = smov 40   ;;  %s1337_s26 = smov 48   ;;  %v1507_v4 = vld [vmem:[%s1464_s25 + $0x18] sm:$0xff]  ;;  %v1522_v5 = vld [vmem:[%s1464_s25 + $0x28] sm:$0xff]  ;;  %v1537_v6 = vld [vmem:[%s1464_s25 + $0x30] sm:$0xff]  ;;  %255 = vst.msk [vmem:[#allocation2] sm:$0xff] %vm254_vm0, %v1340_v7 }
  0x2c   : > { %s1338_s8 = smov 56   ;;  %s1339_s28 = smov 64   ;;  %256 = vst.msk [vmem:[#allocation2 + $0x8] sm:$0xff] %vm254_vm0, %v1340_v7  ;;  %v544_v11 = vld [vmem:[%s1996_s1 + $0x20] sm:$0xf]  ;;  %vm362_vm2 = vcmask 260288  }
  0x2d   : > { %257 = vst.msk [vmem:[#allocation2 + $0x10] sm:$0xff] %vm254_vm0, %v1340_v7  ;;  %v566_v12 = vunpack.c.l.b16 %v544_v11  ;;  %vm588_vm3 = vcmask 1043456   ;;  %vm300_vm4 = vcmask 130112   ;;  %vm395_vm5 = vcmask 326912   ;;  %v1156_v18 = vld [vmem:[%s1996_s1 + $0x18] sm:$0xff]  ;;  %v1155_v19 = vld [vmem:[%s1996_s1 + $0x10] sm:$0xff] }
  0x2e   : > { %258 = vst.msk [vmem:[#allocation2 + $0x18] sm:$0xff] %vm254_vm0, %v1340_v7  ;;  %vm329_vm6 = vcmask 195713   ;;  %v1154_v23 = vld [vmem:[%s1996_s1 + $0x8] sm:$0xff]  ;;  %vm428_vm7 = vcmask 392513   ;;  %v1153_v24 = vld [vmem:[%s1996_s1] sm:$0xff]  ;;  %vm458_vm8 = vcmask 457088  }
  0x2f   : > { %259 = vst.msk [vmem:[#allocation2 + $0x20] sm:$0xff] %vm254_vm0, %v1340_v7  ;;  %v571_v13 = vpack.c.b16 %v566_v12, %v566_v12  ;;  %vm487_vm9 = vcmask 523712   ;;  %v1653_v28 = vld [vmem:[%s1464_s25 + $0x38] sm:$0xff]  ;;  %vm516_vm10 = vcmask 589313   ;;  %vm1000_vm11 = vcmask 64512   ;;  %s1935_s9 = scalar_lea.vmem [#allocation6], %s1105_s14 }
  0x30   : > { %260 = vst.msk [vmem:[#allocation2 + $0x28] sm:$0xff] %vm254_vm0, %v1340_v7  ;;  %s1161_s14 = sshll.u32 %s1393_s22, 6  ;;  %s1282_s11 = scalar_lea.hbm %s2000_s5, 128 }
  0x31   : > { %261 = vst.msk [vmem:[#allocation2 + $0x30] sm:$0xff] %vm254_vm0, %v1340_v7  ;;  %v590_v17 = vsel %vm588_vm3, %v571_v13, 0 }
  0x32   : > { %340 = vrot.lane.b32.xlu1 %v1480_v1, %s1332_s13  ;;  %308 = vrot.lane.b32.xlu0 %v1471_v0, %s1335_s29  ;;  %262 = vst.msk [vmem:[#allocation2 + $0x38] sm:$0xff] %vm254_vm0, %v1340_v7 }
  0x33   : > { %373 = vrot.lane.b32.xlu2 %v1480_v1, %s1334_s16  ;;  %265 = vst.msk [vmem:[#allocation2 + $0x9] sm:$0x7f] %vm264_vm1, %v1471_v0  ;;  %595 = vmatpush.bf16.msra.mxu0 %v590_v17 }
  0x34   : > { %266 = vst.msk [vmem:[#allocation2 + $0x11] sm:$0x7f] %vm264_vm1, %v1480_v1  ;;  %1162 = vmatpush.bf16.msra.mxu2 %v590_v17 }
  0x35   : > { %267 = vst.msk [vmem:[#allocation2 + $0x19] sm:$0x7f] %vm264_vm1, %v1495_v2 }
  0x36   : > { %268 = vst.msk [vmem:[#allocation2 + $0x21] sm:$0x7f] %vm264_vm1, %v1507_v4 }
  0x37   : > { %269 = vst.msk [vmem:[#allocation2 + $0x29] sm:$0x7f] %vm264_vm1, %v1504_v3  ;;  %596 = vmatpush.bf16.msra.mxu0 %v1156_v18 }
  0x38   : > { %270 = vst.msk [vmem:[#allocation2 + $0x31] sm:$0x7f] %vm264_vm1, %v1522_v5  ;;  %1163 = vmatpush.bf16.msra.mxu2 %v1156_v18 }
  0x39   : > { %271 = vst.msk [vmem:[#allocation2 + $0x39] sm:$0x7f] %vm264_vm1, %v1537_v6 }
  0x3a   : > { %406 = vrot.lane.b32.xlu1 %v1480_v1, %s1336_s17  ;;  %404 = vrot.lane.b32.xlu0 %v1471_v0, %s1336_s17 }
  0x3b   : > { %437 = vrot.lane.b32.xlu2 %v1480_v1, %s1337_s26  ;;  %597 = vmatpush.bf16.msra.mxu0 %v1155_v19 }
  0x3c   : > { %1164 = vmatpush.bf16.msra.mxu2 %v1155_v19 }
  0x3f   : > { %598 = vmatpush.bf16.msra.mxu0 %v1154_v23 }
  0x40   : > { %1165 = vmatpush.bf16.msra.mxu2 %v1154_v23 }
  0x42   : > { %466 = vrot.lane.b32.xlu1 %v1480_v1, %s1338_s8  ;;  %439 = vrot.lane.b32.xlu0 %v1495_v2, %s1337_s26 }
  0x43   : > { %468 = vrot.lane.b32.xlu2 %v1495_v2, %s1338_s8  ;;  %599 = vmatpush.bf16.msra.mxu0 %v1153_v24 }
  0x44   : > { %1166 = vmatpush.bf16.msra.mxu2 %v1153_v24 }
  0x4a   : > { %287 = vrot.lane.b32.xlu1 %v1504_v3, %s1333_s15  ;;  %285 = vrot.lane.b32.xlu0 %v1507_v4, %s1333_s15 }
  0x4b   : > { %495 = vrot.lane.b32.xlu2 %v1480_v1, %s1339_s28 }
  0x52   : > { %314 = vrot.lane.b32.xlu1 %v1507_v4, %s1335_s29  ;;  %497 = vrot.lane.b32.xlu0 %v1495_v2, %s1339_s28 }
  0x53   : > { %316 = vrot.lane.b32.xlu2 %v1504_v3, %s1335_s29 }
  0x5a   : > { %348 = vrot.lane.b32.xlu1 %v1522_v5, %s1332_s13  ;;  %346 = vrot.lane.b32.xlu0 %v1504_v3, %s1332_s13 }
  0x5b   : > { %379 = vrot.lane.b32.xlu2 %v1504_v3, %s1334_s16 }
  0x62   : > { %412 = vrot.lane.b32.xlu1 %v1504_v3, %s1336_s17  ;;  %381 = vrot.lane.b32.xlu0 %v1522_v5, %s1334_s16 }
  0x63   : > { %414 = vrot.lane.b32.xlu2 %v1522_v5, %s1336_s17 }
  0x6a   : > { %447 = vrot.lane.b32.xlu1 %v1537_v6, %s1337_s26  ;;  %445 = vrot.lane.b32.xlu0 %v1522_v5, %s1337_s26 }
  0x6b   : > { %474 = vrot.lane.b32.xlu2 %v1522_v5, %s1338_s8 }
  0x72   : > { %503 = vrot.lane.b32.xlu1 %v1522_v5, %s1339_s28  ;;  %476 = vrot.lane.b32.xlu0 %v1537_v6, %s1338_s8 }
  0x73   : > { %505 = vrot.lane.b32.xlu2 %v1537_v6, %s1339_s28 }
  0x7a   : > { %283 = vrot.lane.b32.xlu1 %v1495_v2, %s1333_s15  ;;  %281 = vrot.lane.b32.xlu0 %v1480_v1, %s1333_s15 }
  0x7b   : > { %310 = vrot.lane.b32.xlu2 %v1480_v1, %s1335_s29 }
  0x82   : > { %342 = vrot.lane.b32.xlu1 %v1495_v2, %s1332_s13  ;;  %312 = vrot.lane.b32.xlu0 %v1495_v2, %s1335_s29 }
  0x83   : > { %344 = vrot.lane.b32.xlu2 %v1507_v4, %s1332_s13 }
  0x85   : > { %v372_v8 = vpop.permute.xlu2 %371 }
  0x8a   : > { %377 = vrot.lane.b32.xlu1 %v1507_v4, %s1334_s16  ;;  %375 = vrot.lane.b32.xlu0 %v1495_v2, %s1334_s16 }
  0x8b   : > { %408 = vrot.lane.b32.xlu2 %v1495_v2, %s1336_s17 }
  0x8d   : > { %v374_v9 = vpop.permute.xlu2 %373 }
  0x92   : > { %441 = vrot.lane.b32.xlu1 %v1507_v4, %s1337_s26  ;;  %410 = vrot.lane.b32.xlu0 %v1507_v4, %s1336_s17 }
  0x93   : > { %443 = vrot.lane.b32.xlu2 %v1504_v3, %s1337_s26 }
  0x95   : > { %v438_v10 = vpop.permute.xlu2 %437 }
  0x9a   : > { %472 = vrot.lane.b32.xlu1 %v1504_v3, %s1338_s8  ;;  %470 = vrot.lane.b32.xlu0 %v1507_v4, %s1338_s8 }
  0x9b   : > { %289 = vrot.lane.b32.xlu2 %v1522_v5, %s1333_s15 }
  0x9c   : > { %v339_v14 = vpop.permute.xlu1 %338  ;;  %v280_v15 = vpop.permute.xlu0 %279 }
  0x9d   : > { %363 = vst.msk [vmem:[#allocation2 + $0x1] sm:$0x7f] %vm362_vm2, %v339_v14  ;;  %v469_v16 = vpop.permute.xlu2 %468 }
  0x9e   : > { %301 = vst.msk [vmem:[#allocation2 + $0x8] sm:$0xff] %vm300_vm4, %v280_v15 }
  0x9f   : > { %396 = vst.msk [vmem:[#allocation2] sm:$0xff] %vm395_vm5, %v372_v8 }
  0xa2   : > { %501 = vrot.lane.b32.xlu1 %v1504_v3, %s1339_s28  ;;  %499 = vrot.lane.b32.xlu0 %v1507_v4, %s1339_s28 }
  0xa3   : > { %318 = vrot.lane.b32.xlu2 %v1522_v5, %s1335_s29 }
  0xa4   : > { %v341_v20 = vpop.permute.xlu1 %340  ;;  %v309_v21 = vpop.permute.xlu0 %308 }
  0xa5   : > { %330 = vst.msk [vmem:[#allocation2 + $0x7] sm:$0xfe] %vm329_vm6, %v309_v21  ;;  %v496_v22 = vpop.permute.xlu2 %495 }
  0xa6   : > { %364 = vst.msk [vmem:[#allocation2 + $0x9] sm:$0x7f] %vm362_vm2, %v341_v20 }
  0xa7   : > { %397 = vst.msk [vmem:[#allocation2 + $0x8] sm:$0xff] %vm395_vm5, %v374_v9 }
  0xaa   : > { %291 = vrot.lane.b32.xlu1 %v1537_v6, %s1333_s15  ;;  %350 = vrot.lane.b32.xlu0 %v1537_v6, %s1332_s13 }
  0xab   : > { %383 = vrot.lane.b32.xlu2 %v1537_v6, %s1334_s16 }
  0xac   : > { %v407_v25 = vpop.permute.xlu1 %406  ;;  %v405_v26 = vpop.permute.xlu0 %404 }
  0xad   : > { %430 = vst.msk [vmem:[#allocation2 + $0x7] sm:$0xfe] %vm428_vm7, %v407_v25  ;;  %v317_v27 = vpop.permute.xlu2 %316 }
  0xae   : > { %429 = vst.msk [vmem:[#allocation2 - $0x1] sm:$0xfe] %vm428_vm7, %v405_v26 }
  0xaf   : > { %459 = vst.msk [vmem:[#allocation2 + $0x1] sm:$0x7f] %vm458_vm8, %v438_v10 }
  0xb2   : > { %416 = vrot.lane.b32.xlu1 %v1537_v6, %s1336_s17  ;;  %320 = vrot.lane.b32.xlu0 %v1537_v6, %s1335_s29 }
  0xb3   : > { %352 = vrot.lane.b32.xlu2 %v1653_v28, %s1332_s13 }
  0xb4   : > { %v467_v29 = vpop.permute.xlu1 %466  ;;  %v440_v30 = vpop.permute.xlu0 %439 }
  0xb5   : > { %488 = vst.msk [vmem:[#allocation2] sm:$0xff] %vm487_vm9, %v467_v29  ;;  %v380_v31 = vpop.permute.xlu2 %379 }
  0xb6   : > { %460 = vst.msk [vmem:[#allocation2 + $0x9] sm:$0x7f] %vm458_vm8, %v440_v30 }
  0xb7   : > { %489 = vst.msk [vmem:[#allocation2 + $0x8] sm:$0xff] %vm487_vm9, %v469_v16 }
  0xb8   : > { %517 = vst.msk [vmem:[#allocation2 - $0x1] sm:$0xfe] %vm516_vm10, %v496_v22 }
  0xba   : > { %385 = vrot.lane.b32.xlu1 %v1653_v28, %s1334_s16  ;;  %449 = vrot.lane.b32.xlu0 %v1653_v28, %s1337_s26 }
  0xbb   : > { %478 = vrot.lane.b32.xlu2 %v1653_v28, %s1338_s8 }
  0xbc   : > { %v288_v32 = vpop.permute.xlu1 %287  ;;  %v286_v33 = vpop.permute.xlu0 %285 }
  0xbd   : > { %305 = vst.msk [vmem:[#allocation2 + $0x28] sm:$0xff] %vm300_vm4, %v288_v32  ;;  %v415_v34 = vpop.permute.xlu2 %414 }
  0xbe   : > { %304 = vst.msk [vmem:[#allocation2 + $0x20] sm:$0xff] %vm300_vm4, %v286_v33  ;;  %v1740_v33 = vld [vmem:[%s1997_s2] ss:$0 sm:$0xff] }
  0xbf   : > { %334 = vst.msk [vmem:[#allocation2 + $0x27] sm:$0xfe] %vm329_vm6, %v317_v27  ;;  %v524_v35 = vld [vmem:[#allocation2] sm:$0xff] }
  0xc0   : > { %629 = vst.msk [vmem:[#allocation2] sm:$0xff] %vm254_vm0, %v1340_v7 }
  0xc2   : > { %507 = vrot.lane.b32.xlu1 %v1653_v28, %s1339_s28  ;;  %418 = vrot.lane.b32.xlu0 %v1653_v28, %s1336_s17 }
  0xc4   : > { %v315_v36 = vpop.permute.xlu1 %314  ;;  %v498_v37 = vpop.permute.xlu0 %497 }
  0xc5   : > { %333 = vst.msk [vmem:[#allocation2 + $0x1f] sm:$0xfe] %vm329_vm6, %v315_v36  ;;  %v475_v38 = vpop.permute.xlu2 %474 }
  0xc6   : > { %518 = vst.msk [vmem:[#allocation2 + $0x7] sm:$0xfe] %vm516_vm10, %v498_v37 }
  0xcc   : > { %v349_v39 = vpop.permute.xlu1 %348  ;;  %v347_v40 = vpop.permute.xlu0 %346 }
  0xcd   : > { %368 = vst.msk [vmem:[#allocation2 + $0x29] sm:$0x7f] %vm362_vm2, %v349_v39  ;;  %v525_v41 = vld [vmem:[#allocation2 + $0x8] sm:$0xff]  ;;  %v506_v42 = vpop.permute.xlu2 %505 }
  0xce   : > { %367 = vst.msk [vmem:[#allocation2 + $0x21] sm:$0x7f] %vm362_vm2, %v347_v40  ;;  %v532_v43 = vpack.c.bf16 %v525_v41, %v524_v35 }
  0xcf   : > { %400 = vst.msk [vmem:[#allocation2 + $0x20] sm:$0xff] %vm395_vm5, %v380_v31 }
  0xd0   : > { %1123 = vmatmul.msk.bf16.vlgmr.msra.gmra.mxu0 %vm254_vm0, %v532_v43  ;;  %630 = vst.msk [vmem:[#allocation2 + $0x8] sm:$0xff] %vm254_vm0, %v1340_v7 }
  0xd4   : > { %v413_v44 = vpop.permute.xlu1 %412  ;;  %v382_v45 = vpop.permute.xlu0 %381 }
  0xd5   : > { %433 = vst.msk [vmem:[#allocation2 + $0x1f] sm:$0xfe] %vm428_vm7, %v413_v44  ;;  %v311_v46 = vpop.permute.xlu2 %310 }
  0xd6   : > { %401 = vst.msk [vmem:[#allocation2 + $0x28] sm:$0xff] %vm395_vm5, %v382_v45 }
  0xd7   : > { %434 = vst.msk [vmem:[#allocation2 + $0x27] sm:$0xfe] %vm428_vm7, %v415_v34 }
  0xdc   : > { %v448_v47 = vpop.permute.xlu1 %447  ;;  %v446_v48 = vpop.permute.xlu0 %445 }
  0xdd   : > { %464 = vst.msk [vmem:[#allocation2 + $0x29] sm:$0x7f] %vm458_vm8, %v448_v47  ;;  %v345_v49 = vpop.permute.xlu2 %344 }
  0xde   : > { %463 = vst.msk [vmem:[#allocation2 + $0x21] sm:$0x7f] %vm458_vm8, %v446_v48 }
  0xdf   : > { %492 = vst.msk [vmem:[#allocation2 + $0x20] sm:$0xff] %vm487_vm9, %v475_v38 }
  0xe4   : > { %v504_v50 = vpop.permute.xlu1 %503  ;;  %v477_v51 = vpop.permute.xlu0 %476 }
  0xe5   : > { %521 = vst.msk [vmem:[#allocation2 + $0x1f] sm:$0xfe] %vm516_vm10, %v504_v50  ;;  %v409_v52 = vpop.permute.xlu2 %408 }
  0xe6   : > { %493 = vst.msk [vmem:[#allocation2 + $0x28] sm:$0xff] %vm487_vm9, %v477_v51 }
  0xe7   : > { %522 = vst.msk [vmem:[#allocation2 + $0x27] sm:$0xfe] %vm516_vm10, %v506_v42 }
  0xec   : > { %v284_v53 = vpop.permute.xlu1 %283  ;;  %v282_v54 = vpop.permute.xlu0 %281  ;;  %v528_v55 = vld [vmem:[#allocation2 + $0x20] sm:$0xff] }
  0xed   : > { %303 = vst.msk [vmem:[#allocation2 + $0x18] sm:$0xff] %vm300_vm4, %v284_v53  ;;  %v444_v56 = vpop.permute.xlu2 %443 }
  0xee   : > { %302 = vst.msk [vmem:[#allocation2 + $0x10] sm:$0xff] %vm300_vm4, %v282_v54  ;;  %v529_v57 = vld [vmem:[#allocation2 + $0x28] sm:$0xff] }
  0xef   : > { %v534_v58 = vpack.c.bf16 %v529_v57, %v528_v55  ;;  %633 = vst.msk [vmem:[#allocation2 + $0x20] sm:$0xff] %vm254_vm0, %v1340_v7 }
  0xf0   : > { %634 = vst.msk [vmem:[#allocation2 + $0x28] sm:$0xff] %vm254_vm0, %v1340_v7 }
  0xf1   : > { %1125 = vmatmul.msk.bf16.vlgmr.msra.gmra.mxu2 %vm254_vm0, %v534_v58  ;;  %331 = vst.msk [vmem:[#allocation2 + $0xf] sm:$0xfe] %vm329_vm6, %v311_v46 }
  0xf4   : > { %v343_v59 = vpop.permute.xlu1 %342  ;;  %v313_v60 = vpop.permute.xlu0 %312 }
  0xf5   : > { %365 = vst.msk [vmem:[#allocation2 + $0x11] sm:$0x7f] %vm362_vm2, %v343_v59  ;;  %v290_v61 = vpop.permute.xlu2 %289 }
  0xf6   : > { %332 = vst.msk [vmem:[#allocation2 + $0x17] sm:$0xfe] %vm329_vm6, %v313_v60 }
  0xf7   : > { %366 = vst.msk [vmem:[#allocation2 + $0x19] sm:$0x7f] %vm362_vm2, %v345_v49 }
  0xf8   : > { %306 = vst.msk [vmem:[#allocation2 + $0x30] sm:$0xff] %vm300_vm4, %v290_v61 }
  0xfc   : > { %v378_v62 = vpop.permute.xlu1 %377  ;;  %v376_v63 = vpop.permute.xlu0 %375 }
  0xfd   : > { %399 = vst.msk [vmem:[#allocation2 + $0x18] sm:$0xff] %vm395_vm5, %v378_v62  ;;  %v319_v8 = vpop.permute.xlu2 %318 }
  0xfe   : > { %398 = vst.msk [vmem:[#allocation2 + $0x10] sm:$0xff] %vm395_vm5, %v376_v63 }
  0xff   : > { %431 = vst.msk [vmem:[#allocation2 + $0xf] sm:$0xfe] %vm428_vm7, %v409_v52 }
 0x100   : > { %335 = vst.msk [vmem:[#allocation2 + $0x2f] sm:$0xfe] %vm329_vm6, %v319_v8 }
 0x104   : > { %v442_v9 = vpop.permute.xlu1 %441  ;;  %v411_v10 = vpop.permute.xlu0 %410 }
 0x105   : > { %461 = vst.msk [vmem:[#allocation2 + $0x11] sm:$0x7f] %vm458_vm8, %v442_v9  ;;  %v384_v15 = vpop.permute.xlu2 %383 }
 0x106   : > { %432 = vst.msk [vmem:[#allocation2 + $0x17] sm:$0xfe] %vm428_vm7, %v411_v10 }
 0x107   : > { %462 = vst.msk [vmem:[#allocation2 + $0x19] sm:$0x7f] %vm458_vm8, %v444_v56 }
 0x10c   : > { %v473_v11 = vpop.permute.xlu1 %472  ;;  %v471_v12 = vpop.permute.xlu0 %470 }
 0x10d   : > { %491 = vst.msk [vmem:[#allocation2 + $0x18] sm:$0xff] %vm487_vm9, %v473_v11  ;;  %v353_v21 = vpop.permute.xlu2 %352 }
 0x10e   : > { %490 = vst.msk [vmem:[#allocation2 + $0x10] sm:$0xff] %vm487_vm9, %v471_v12 }
 0x114   : > { %v502_v13 = vpop.permute.xlu1 %501  ;;  %v500_v14 = vpop.permute.xlu0 %499 }
 0x115   : > { %520 = vst.msk [vmem:[#allocation2 + $0x17] sm:$0xfe] %vm516_vm10, %v502_v13  ;;  %v479_v24 = vpop.permute.xlu2 %478 }
 0x116   : > { %519 = vst.msk [vmem:[#allocation2 + $0xf] sm:$0xfe] %vm516_vm10, %v500_v14 }
 0x11c   : > { %v292_v16 = vpop.permute.xlu1 %291  ;;  %v351_v17 = vpop.permute.xlu0 %350  ;;  %v527_v18 = vld [vmem:[#allocation2 + $0x18] sm:$0xff] }
 0x11d   : > { %307 = vst.msk [vmem:[#allocation2 + $0x38] sm:$0xff] %vm300_vm4, %v292_v16  ;;  %v526_v19 = vld [vmem:[#allocation2 + $0x10] sm:$0xff] }
 0x11e   : > { %369 = vst.msk [vmem:[#allocation2 + $0x31] sm:$0x7f] %vm362_vm2, %v351_v17  ;;  %v533_v20 = vpack.c.bf16 %v527_v18, %v526_v19 }
 0x11f   : > { %631 = vst.msk [vmem:[#allocation2 + $0x10] sm:$0xff] %vm254_vm0, %v1340_v7 }
 0x120   : > { %1124 = vmatmul.msk.bf16.gmra.mxu0 %vm254_vm0, %v533_v20  ;;  %632 = vst.msk [vmem:[#allocation2 + $0x18] sm:$0xff] %vm254_vm0, %v1340_v7 }
 0x121   : > { %402 = vst.msk [vmem:[#allocation2 + $0x30] sm:$0xff] %vm395_vm5, %v384_v15 }
 0x124   : > { %v417_v22 = vpop.permute.xlu1 %416  ;;  %v321_v23 = vpop.permute.xlu0 %320 }
 0x125   : > { %435 = vst.msk [vmem:[#allocation2 + $0x2f] sm:$0xfe] %vm428_vm7, %v417_v22 }
 0x126   : > { %336 = vst.msk [vmem:[#allocation2 + $0x37] sm:$0xfe] %vm329_vm6, %v321_v23 }
 0x127   : > { %370 = vst.msk [vmem:[#allocation2 + $0x39] sm:$0x7f] %vm362_vm2, %v353_v21 }
 0x12c   : > { %v386_v25 = vpop.permute.xlu1 %385  ;;  %v450_v26 = vpop.permute.xlu0 %449 }
 0x12d   : > { %403 = vst.msk [vmem:[#allocation2 + $0x38] sm:$0xff] %vm395_vm5, %v386_v25 }
 0x12e   : > { %465 = vst.msk [vmem:[#allocation2 + $0x31] sm:$0x7f] %vm458_vm8, %v450_v26 }
 0x12f   : > { %494 = vst.msk [vmem:[#allocation2 + $0x30] sm:$0xff] %vm487_vm9, %v479_v24  ;;  %v908_v24 = vld [vmem:[%s1998_s3 + $0x20] sm:$0xf] }
 0x134   : > { %v508_v27 = vpop.permute.xlu1 %507  ;;  %v419_v29 = vpop.permute.xlu0 %418 }
 0x135   : > { %523 = vst.msk [vmem:[#allocation2 + $0x2f] sm:$0xfe] %vm516_vm10, %v508_v27  ;;  %v930_v27 = vunpack.c.l.b16 %v908_v24  ;;  %v1231_v24 = vld [vmem:[%s1999_s4] ss:$0 sm:$0xff] }
 0x136   : > { %436 = vst.msk [vmem:[#allocation2 + $0x37] sm:$0xfe] %vm428_vm7, %v419_v29 }
 0x137   : > { %v935_v29 = vpack.c.b16 %v930_v27, %v930_v27 }
 0x13c   : > { %v530_v30 = vld [vmem:[#allocation2 + $0x30] sm:$0xff] }
 0x13d   : > { %v531_v31 = vld [vmem:[#allocation2 + $0x38] sm:$0xff]  ;;  %635 = vst.msk [vmem:[#allocation2 + $0x30] sm:$0xff] %vm254_vm0, %v1340_v7 }
 0x13e   : > { %v535_v32 = vpack.c.bf16 %v531_v31, %v530_v30  ;;  %636 = vst.msk [vmem:[#allocation2 + $0x38] sm:$0xff] %vm254_vm0, %v1340_v7  ;;  %v953_v30 = vsel %vm588_vm3, %v935_v29, 0  ;;  %v1160_v31 = vld [vmem:[%s1998_s3 + $0x18] sm:$0xff] }
 0x13f   : > { %958 = vmatpush.bf16.msra.mxu1 %v953_v30  ;;  %1167 = vmatpush.bf16.msra.mxu3 %v953_v30 }
 0x140   : > { %1126 = vmatmul.msk.bf16.gmra.mxu2 %vm254_vm0, %v535_v32 }
 0x143   : > { %959 = vmatpush.bf16.msra.mxu1 %v1160_v31  ;;  %1168 = vmatpush.bf16.msra.mxu3 %v1160_v31 }
 0x14d   : > { %v601_v34 = vpop.f32.mrf.mxu0 }
 0x14e   : > { %v602_v35 = vadd.f32 %v1740_v33, %v601_v34 }
 0x150   : > { %v621_v36 = vmax.f32 %v602_v35, 0.0  ;;  %v1159_v35 = vld [vmem:[%s1998_s3 + $0x10] sm:$0xff] }
 0x151   : > { %960 = vmatpush.bf16.msra.mxu1 %v1159_v35  ;;  %1169 = vmatpush.bf16.msra.mxu3 %v1159_v35 }
 0x152   : > { %637 = vst.msk [vmem:[#allocation2 + $0x9] sm:$0x7f] %vm264_vm1, %v621_v36  ;;  %772 = vrot.lane.b32.xlu0 %v621_v36, %s1336_s17  ;;  %740 = vrot.lane.b32.xlu1 %v621_v36, %s1334_s16 }
 0x153   : > { %651 = vrot.lane.b32.xlu2 %v621_v36, %s1333_s15 }
 0x155   : > { %v603_v7 = vpop.f32.mrf.mxu0 }
 0x156   : > { %v604_v37 = vadd.f32 %v1740_v33, %v603_v7 }
 0x158   : > { %v622_v38 = vmax.f32 %v604_v37, 0.0 }
 0x15a   : > { %638 = vst.msk [vmem:[#allocation2 + $0x11] sm:$0x7f] %vm264_vm1, %v622_v38 }
 0x15b   : > { %679 = vrot.lane.b32.xlu2 %v621_v36, %s1335_s29 }
 0x163   : > { %708 = vrot.lane.b32.xlu2 %v621_v36, %s1332_s13  ;;  %v1158_v36 = vld [vmem:[%s1998_s3 + $0x8] sm:$0xff] }
 0x164   : > { %961 = vmatpush.bf16.msra.mxu1 %v1158_v36  ;;  %1170 = vmatpush.bf16.msra.mxu3 %v1158_v36 }
 0x174   : > { %v611_v39 = vpop.f32.mrf.mxu2 }
 0x175   : > { %v612_v40 = vadd.f32 %v1740_v33, %v611_v39  ;;  %v1157_v39 = vld [vmem:[%s1998_s3] sm:$0xff] }
 0x176   : > { %962 = vmatpush.bf16.msra.mxu1 %v1157_v39  ;;  %1171 = vmatpush.bf16.msra.mxu3 %v1157_v39 }
 0x177   : > { %v1752_v41 = vmax.f32 %v612_v40, 0.0 }
 0x179   : > { %641 = vst.msk [vmem:[#allocation2 + $0x29] sm:$0x7f] %vm264_vm1, %v1752_v41  ;;  %659 = vrot.lane.b32.xlu0 %v1752_v41, %s1333_s15  ;;  %780 = vrot.lane.b32.xlu1 %v1752_v41, %s1336_s17 }
 0x17a   : > { %687 = vrot.lane.b32.xlu2 %v1752_v41, %s1335_s29 }
 0x17c   : > { %v613_v42 = vpop.f32.mrf.mxu2 }
 0x17d   : > { %v614_v43 = vadd.f32 %v1740_v33, %v613_v42 }
 0x17f   : > { %v626_v44 = vmax.f32 %v614_v43, 0.0 }
 0x181   : > { %642 = vst.msk [vmem:[#allocation2 + $0x31] sm:$0x7f] %vm264_vm1, %v626_v44  ;;  %716 = vrot.lane.b32.xlu0 %v1752_v41, %s1332_s13  ;;  %774 = vrot.lane.b32.xlu1 %v622_v38, %s1336_s17 }
 0x182   : > { %748 = vrot.lane.b32.xlu2 %v1752_v41, %s1334_s16 }
 0x189   : > { %710 = vrot.lane.b32.xlu0 %v622_v38, %s1332_s13  ;;  %832 = vrot.lane.b32.xlu1 %v622_v38, %s1338_s8 }
 0x18a   : > { %810 = vrot.lane.b32.xlu2 %v1752_v41, %s1337_s26 }
 0x191   : > { %860 = vrot.lane.b32.xlu0 %v622_v38, %s1339_s28  ;;  %718 = vrot.lane.b32.xlu1 %v626_v44, %s1332_s13 }
 0x192   : > { %742 = vrot.lane.b32.xlu2 %v622_v38, %s1334_s16 }
 0x199   : > { %681 = vrot.lane.b32.xlu0 %v622_v38, %s1335_s29 }
 0x19a   : > { %804 = vrot.lane.b32.xlu2 %v622_v38, %s1337_s26 }
 0x19d   : > { %v606_v45 = vpop.f32.mrf.mxu0 }
 0x19e   : > { %v607_v46 = vadd.f32 %v1740_v33, %v606_v45 }
 0x1a0   : > { %v623_v47 = vmax.f32 %v607_v46, 0.0 }
 0x1a1   : > { %750 = vrot.lane.b32.xlu0 %v626_v44, %s1334_s16 }
 0x1a2   : > { %639 = vst.msk [vmem:[#allocation2 + $0x19] sm:$0x7f] %vm264_vm1, %v623_v47  ;;  %653 = vrot.lane.b32.xlu2 %v622_v38, %s1333_s15  ;;  %862 = vrot.lane.b32.xlu1 %v623_v47, %s1339_s28 }
 0x1a5   : > { %v608_v48 = vpop.f32.mrf.mxu0 }
 0x1a6   : > { %v609_v49 = vadd.f32 %v1740_v33, %v608_v48 }
 0x1a8   : > { %v1784_v50 = vmax.f32 %v609_v49, 0.0 }
 0x1a9   : > { %812 = vrot.lane.b32.xlu0 %v626_v44, %s1337_s26 }
 0x1aa   : > { %640 = vst.msk [vmem:[#allocation2 + $0x21] sm:$0x7f] %vm264_vm1, %v1784_v50  ;;  %782 = vrot.lane.b32.xlu2 %v626_v44, %s1336_s17  ;;  %683 = vrot.lane.b32.xlu1 %v623_v47, %s1335_s29 }
 0x1ad   : > { %v652_v51 = vpop.permute.xlu2 %651 }
 0x1ae   : > { %672 = vst.msk [vmem:[#allocation2 + $0x8] sm:$0xff] %vm300_vm4, %v652_v51 }
 0x1b1   : > { %840 = vrot.lane.b32.xlu0 %v626_v44, %s1338_s8 }
 0x1b2   : > { %661 = vrot.lane.b32.xlu2 %v626_v44, %s1333_s15  ;;  %712 = vrot.lane.b32.xlu1 %v623_v47, %s1332_s13 }
 0x1b5   : > { %v680_v52 = vpop.permute.xlu2 %679 }
 0x1b6   : > { %700 = vst.msk [vmem:[#allocation2 + $0x7] sm:$0xfe] %vm329_vm6, %v680_v52 }
 0x1b9   : > { %868 = vrot.lane.b32.xlu0 %v626_v44, %s1339_s28 }
 0x1ba   : > { %834 = vrot.lane.b32.xlu2 %v623_v47, %s1338_s8 }
 0x1bd   : > { %v709_v53 = vpop.permute.xlu2 %708 }
 0x1be   : > { %732 = vst.msk [vmem:[#allocation2 + $0x1] sm:$0x7f] %vm362_vm2, %v709_v53 }
 0x1c1   : > { %689 = vrot.lane.b32.xlu0 %v626_v44, %s1335_s29 }
 0x1c2   : > { %776 = vrot.lane.b32.xlu2 %v623_v47, %s1336_s17 }
 0x1c3   : > { %v616_v54 = vpop.f32.mrf.mxu2 }
 0x1c4   : > { %v617_v55 = vadd.f32 %v1740_v33, %v616_v54  ;;  %v773_v56 = vpop.permute.xlu0 %772  ;;  %v741_v57 = vpop.permute.xlu1 %740 }
 0x1c5   : > { %764 = vst.msk [vmem:[#allocation2] sm:$0xff] %vm395_vm5, %v741_v57 }
 0x1c6   : > { %v627_v58 = vmax.f32 %v617_v55, 0.0  ;;  %796 = vst.msk [vmem:[#allocation2 - $0x1] sm:$0xfe] %vm428_vm7, %v773_v56 }
 0x1c8   : > { %643 = vst.msk [vmem:[#allocation2 + $0x39] sm:$0x7f] %vm264_vm1, %v627_v58  ;;  %814 = vrot.lane.b32.xlu1 %v627_v58, %s1337_s26 }
 0x1c9   : > { %806 = vrot.lane.b32.xlu0 %v623_v47, %s1337_s26 }
 0x1ca   : > { %663 = vrot.lane.b32.xlu2 %v627_v58, %s1333_s15 }
 0x1cb   : > { %v618_v61 = vpop.f32.mrf.mxu2 }
 0x1cc   : > { %v619_v62 = vadd.f32 %v1740_v33, %v618_v61 }
 0x1ce   : > { %v628_v8 = vmax.f32 %v619_v62, 0.0 }
 0x1d0   : > { %842 = vrot.lane.b32.xlu1 %v627_v58, %s1338_s8 }
 0x1d1   : > { %655 = vrot.lane.b32.xlu0 %v623_v47, %s1333_s15 }
 0x1d2   : > { %784 = vrot.lane.b32.xlu2 %v627_v58, %s1336_s17 }
 0x1d4   : > { %v688_v59 = vpop.permute.xlu2 %687 }
 0x1d8   : > { %870 = vrot.lane.b32.xlu1 %v627_v58, %s1339_s28 }
 0x1d9   : > { %744 = vrot.lane.b32.xlu0 %v623_v47, %s1334_s16 }
 0x1da   : > { %657 = vrot.lane.b32.xlu2 %v1784_v50, %s1333_s15 }
 0x1dc   : > { %v1815_v60 = vpop.permute.xlu2 %748 }
 0x1e0   : > { %720 = vrot.lane.b32.xlu1 %v627_v58, %s1332_s13 }
 0x1e1   : > { %752 = vrot.lane.b32.xlu0 %v627_v58, %s1334_s16 }
 0x1e2   : > { %714 = vrot.lane.b32.xlu2 %v1784_v50, %s1332_s13 }
 0x1e4   : > { %v1822_v63 = vpop.permute.xlu2 %810 }
 0x1e8   : > { %691 = vrot.lane.b32.xlu1 %v627_v58, %s1335_s29 }
 0x1e9   : > { %778 = vrot.lane.b32.xlu0 %v1784_v50, %s1336_s17 }
 0x1ea   : > { %844 = vrot.lane.b32.xlu2 %v628_v8, %s1338_s8 }
 0x1eb   : > { %v660_v9 = vpop.permute.xlu0 %659  ;;  %v1828_v10 = vpop.permute.xlu1 %780 }
 0x1ec   : > { %676 = vst.msk [vmem:[#allocation2 + $0x28] sm:$0xff] %vm300_vm4, %v660_v9  ;;  %v743_v11 = vpop.permute.xlu2 %742 }
 0x1ed   : > { %704 = vst.msk [vmem:[#allocation2 + $0x27] sm:$0xfe] %vm329_vm6, %v688_v59 }
 0x1f0   : > { %685 = vrot.lane.b32.xlu1 %v1784_v50, %s1335_s29 }
 0x1f1   : > { %722 = vrot.lane.b32.xlu0 %v628_v8, %s1332_s13 }
 0x1f2   : > { %786 = vrot.lane.b32.xlu2 %v628_v8, %s1336_s17  ;;  %s1022_s17 = sshll.u32 %s1935_s9, 4  ;;  %s1023_s17 = int_to_ptr.vmem [resolvable:$true] %s1022_s17 }
 0x1f3   : > { %v1836_v12 = vpop.permute.xlu0 %716  ;;  %v775_v13 = vpop.permute.xlu1 %774 }
 0x1f4   : > { %v805_v14 = vpop.permute.xlu2 %804 }
 0x1f5   : > { %825 = vst.msk [vmem:[#allocation2 + $0x1] sm:$0x7f] %vm458_vm8, %v805_v14 }
 0x1f8   : > { %746 = vrot.lane.b32.xlu1 %v1784_v50, %s1334_s16 }
 0x1f9   : > { %872 = vrot.lane.b32.xlu0 %v628_v8, %s1339_s28 }
 0x1fa   : > { %864 = vrot.lane.b32.xlu2 %v1784_v50, %s1339_s28 }
 0x1fb   : > { %v711_v15 = vpop.permute.xlu0 %710  ;;  %v833_v16 = vpop.permute.xlu1 %832 }
 0x1fc   : > { %733 = vst.msk [vmem:[#allocation2 + $0x9] sm:$0x7f] %vm362_vm2, %v711_v15  ;;  %v654_v17 = vpop.permute.xlu2 %653 }
 0x1fd   : > { %765 = vst.msk [vmem:[#allocation2 + $0x8] sm:$0xff] %vm395_vm5, %v743_v11 }
 0x1fe   : > { %853 = vst.msk [vmem:[#allocation2] sm:$0xff] %vm487_vm9, %v833_v16 }
 0x1ff   : > { %797 = vst.msk [vmem:[#allocation2 + $0x7] sm:$0xfe] %vm428_vm7, %v775_v13 }
 0x200   : > { %673 = vst.msk [vmem:[#allocation2 + $0x10] sm:$0xff] %vm300_vm4, %v654_v17  ;;  %808 = vrot.lane.b32.xlu1 %v1784_v50, %s1337_s26 }
 0x201   : > { %836 = vrot.lane.b32.xlu0 %v1784_v50, %s1338_s8 }
 0x203   : > { %v861_v18 = vpop.permute.xlu0 %860  ;;  %v719_v19 = vpop.permute.xlu1 %718 }
 0x204   : > { %881 = vst.msk [vmem:[#allocation2 - $0x1] sm:$0xfe] %vm516_vm10, %v861_v18  ;;  %v783_v20 = vpop.permute.xlu2 %782 }
 0x205   : > { %737 = vst.msk [vmem:[#allocation2 + $0x29] sm:$0x7f] %vm362_vm2, %v719_v19 }
 0x208   : > { %816 = vrot.lane.b32.xlu1 %v628_v8, %s1337_s26  ;;  %s1010_s26 = scalar_lea.sflag [#allocation5], %s1458_s12 }
 0x209   : > { %866 = vrot.lane.b32.xlu0 %v1752_v41, %s1339_s28 }
 0x20b   : > { %v682_v21 = vpop.permute.xlu0 %681  ;;  %v888_v49 = vld [vmem:[#allocation2] sm:$0xff] }
 0x20c   : > { %701 = vst.msk [vmem:[#allocation2 + $0xf] sm:$0xfe] %vm329_vm6, %v682_v21  ;;  %v662_v22 = vpop.permute.xlu2 %661 }
 0x20d   : > { %677 = vst.msk [vmem:[#allocation2 + $0x30] sm:$0xff] %vm300_vm4, %v662_v22 }
 0x210   : > { %754 = vrot.lane.b32.xlu1 %v628_v8, %s1334_s16  ;;  %s1021_s16 = scalar_lea.hbm %s2000_s5, %s1161_s14 }
 0x211   : > { %s1024_s22 = sshll.u32 %s1021_s16, 4  ;;  %s1025_s22 = int_to_ptr.hbm [resolvable:$true] %s1024_s22 }
 0x212   : > { %s1276_s28 = sshra.s32 %s1025_s22, 4  ;;  %s1277_s28 = int_to_ptr.hbm [resolvable:$true] %s1276_s28 }
 0x213   : > { %v751_v23 = vpop.permute.xlu0 %750  ;;  %s1278_s10 = scalar_lea.hbm %s1277_s28, 64  ;;  %p1283_p0 = scmp.lt.s32.totalorder %s1277_s28, %s2000_s5 }
 0x214   : > { %769 = vst.msk [vmem:[#allocation2 + $0x28] sm:$0xff] %vm395_vm5, %v751_v23  ;;  %v835_v25 = vpop.permute.xlu2 %834  ;;  %v863_v26 = vpop.permute.xlu1 %862  ;;  %p1279_p6 = scmp.ne.s32.totalorder %s1277_s28, %s1278_s10  ;;  %p1284_p1 = scmp.lt.s32.totalorder %s1282_s11, %s1278_s10 }
 0x215   : > { %801 = vst.msk [vmem:[#allocation2 + $0x27] sm:$0xfe] %vm428_vm7, %v783_v20 }
 0x216   : > { %p1280_p9 = pnand %p1279_p6, %p1422_p11  ;;  %p1285_p3 = por %p1284_p1, %p1283_p0 }
 0x218   : > { %838 = vrot.lane.b32.xlu1 %v1752_v41, %s1338_s8  ;;  %p1281_p13 = pneg %p1280_p9 }
 0x21a   : > { %p1286_p4 = pnand %p1285_p3, %p1281_p13 }
 0x21b   : > { %v813_v32 = vpop.permute.xlu0 %812 }
 0x21c   : > { %v777_v33 = vpop.permute.xlu2 %776  ;;  %v684_v34 = vpop.permute.xlu1 %683 }
 0x223   : > { %v841_v7 = vpop.permute.xlu0 %840 }
 0x224   : > { %v664_v37 = vpop.permute.xlu2 %663  ;;  %v713_v38 = vpop.permute.xlu1 %712 }
 0x225   : > { %678 = vst.msk [vmem:[#allocation2 + $0x38] sm:$0xff] %vm300_vm4, %v664_v37 }
 0x226   : > { %734 = vst.msk [vmem:[#allocation2 + $0x11] sm:$0x7f] %vm362_vm2, %v713_v38 }
 0x22b   : > { %v869_v40 = vpop.permute.xlu0 %868 }
 0x22c   : > { %v785_v41 = vpop.permute.xlu2 %784 }
 0x233   : > { %v690_v42 = vpop.permute.xlu0 %689 }
 0x234   : > { %705 = vst.msk [vmem:[#allocation2 + $0x2f] sm:$0xfe] %vm329_vm6, %v690_v42  ;;  %v658_v43 = vpop.permute.xlu2 %657 }
 0x235   : > { %675 = vst.msk [vmem:[#allocation2 + $0x20] sm:$0xff] %vm300_vm4, %v658_v43 }
 0x23a   : > { %v815_v44 = vpop.permute.xlu1 %814 }
 0x23b   : > { %830 = vst.msk [vmem:[#allocation2 + $0x29] sm:$0x7f] %vm458_vm8, %v815_v44  ;;  %v807_v45 = vpop.permute.xlu0 %806 }
 0x23c   : > { %826 = vst.msk [vmem:[#allocation2 + $0x9] sm:$0x7f] %vm458_vm8, %v807_v45  ;;  %v715_v48 = vpop.permute.xlu2 %714 }
 0x23d   : > { %854 = vst.msk [vmem:[#allocation2 + $0x8] sm:$0xff] %vm487_vm9, %v835_v25 }
 0x23e   : > { %882 = vst.msk [vmem:[#allocation2 + $0x7] sm:$0xfe] %vm516_vm10, %v863_v26 }
 0x242   : > { %v843_v46 = vpop.permute.xlu1 %842 }
 0x243   : > { %858 = vst.msk [vmem:[#allocation2 + $0x28] sm:$0xff] %vm487_vm9, %v843_v46  ;;  %v656_v47 = vpop.permute.xlu0 %655 }
 0x244   : > { %674 = vst.msk [vmem:[#allocation2 + $0x18] sm:$0xff] %vm300_vm4, %v656_v47  ;;  %v845_v58 = vpop.permute.xlu2 %844 }
 0x245   : > { %702 = vst.msk [vmem:[#allocation2 + $0x17] sm:$0xfe] %vm329_vm6, %v684_v34  ;;  %v889_v50 = vld [vmem:[#allocation2 + $0x8] sm:$0xff] }
 0x246   : > { %735 = vst.msk [vmem:[#allocation2 + $0x19] sm:$0x7f] %vm362_vm2, %v715_v48  ;;  %v896_v51 = vpack.c.bf16 %v889_v50, %v888_v49 }
 0x248   : > { %1143 = vmatmul.msk.bf16.vlgmr.msra.gmra.mxu1 %vm254_vm0, %v896_v51 }
 0x24a   : > { %v871_v52 = vpop.permute.xlu1 %870 }
 0x24b   : > { %886 = vst.msk [vmem:[#allocation2 + $0x27] sm:$0xfe] %vm516_vm10, %v871_v52  ;;  %v745_v53 = vpop.permute.xlu0 %744 }
 0x24c   : > { %766 = vst.msk [vmem:[#allocation2 + $0x10] sm:$0xff] %vm395_vm5, %v745_v53  ;;  %v787_v62 = vpop.permute.xlu2 %786 }
 0x24d   : > { %798 = vst.msk [vmem:[#allocation2 + $0xf] sm:$0xfe] %vm428_vm7, %v777_v33 }
 0x252   : > { %v721_v54 = vpop.permute.xlu1 %720 }
 0x253   : > { %738 = vst.msk [vmem:[#allocation2 + $0x31] sm:$0x7f] %vm362_vm2, %v721_v54  ;;  %v753_v55 = vpop.permute.xlu0 %752 }
 0x254   : > { %770 = vst.msk [vmem:[#allocation2 + $0x30] sm:$0xff] %vm395_vm5, %v753_v55  ;;  %v865_v14 = vpop.permute.xlu2 %864 }
 0x255   : > { %802 = vst.msk [vmem:[#allocation2 + $0x2f] sm:$0xfe] %vm428_vm7, %v785_v41 }
 0x25a   : > { %v692_v56 = vpop.permute.xlu1 %691 }
 0x25b   : > { %706 = vst.msk [vmem:[#allocation2 + $0x37] sm:$0xfe] %vm329_vm6, %v692_v56  ;;  %v779_v57 = vpop.permute.xlu0 %778 }
 0x262   : > { %v686_v59 = vpop.permute.xlu1 %685 }
 0x263   : > { %703 = vst.msk [vmem:[#allocation2 + $0x1f] sm:$0xfe] %vm329_vm6, %v686_v59  ;;  %v723_v61 = vpop.permute.xlu0 %722 }
 0x264   : > { %736 = vst.msk [vmem:[#allocation2 + $0x21] sm:$0x7f] %vm362_vm2, %v1836_v12 }
 0x265   : > { %768 = vst.msk [vmem:[#allocation2 + $0x20] sm:$0xff] %vm395_vm5, %v1815_v60 }
 0x266   : > { %800 = vst.msk [vmem:[#allocation2 + $0x1f] sm:$0xfe] %vm428_vm7, %v1828_v10  ;;  %v893_v10 = vld [vmem:[#allocation2 + $0x28] sm:$0xff] }
 0x267   : > { %829 = vst.msk [vmem:[#allocation2 + $0x21] sm:$0x7f] %vm458_vm8, %v813_v32 }
 0x268   : > { %857 = vst.msk [vmem:[#allocation2 + $0x20] sm:$0xff] %vm487_vm9, %v841_v7 }
 0x269   : > { %885 = vst.msk [vmem:[#allocation2 + $0x1f] sm:$0xfe] %vm516_vm10, %v869_v40 }
 0x26a   : > { %739 = vst.msk [vmem:[#allocation2 + $0x39] sm:$0x7f] %vm362_vm2, %v723_v61  ;;  %v747_v8 = vpop.permute.xlu1 %746 }
 0x26b   : > { %767 = vst.msk [vmem:[#allocation2 + $0x18] sm:$0xff] %vm395_vm5, %v747_v8  ;;  %v873_v9 = vpop.permute.xlu0 %872 }
 0x26c   : > { %799 = vst.msk [vmem:[#allocation2 + $0x17] sm:$0xfe] %vm428_vm7, %v779_v57 }
 0x26d   : > { %828 = vst.msk [vmem:[#allocation2 + $0x19] sm:$0x7f] %vm458_vm8, %v1822_v63 }
 0x270   : > { %v892_v60 = vld [vmem:[#allocation2 + $0x20] sm:$0xff] }
 0x271   : > { %v898_v11 = vpack.c.bf16 %v893_v10, %v892_v60 }
 0x272   : > { %v809_v12 = vpop.permute.xlu1 %808 }
 0x273   : > { %827 = vst.msk [vmem:[#allocation2 + $0x11] sm:$0x7f] %vm458_vm8, %v809_v12  ;;  %v837_v13 = vpop.permute.xlu0 %836  ;;  %1145 = vmatmul.msk.bf16.vlgmr.msra.gmra.mxu3 %vm254_vm0, %v898_v11 }
 0x274   : > { %855 = vst.msk [vmem:[#allocation2 + $0x10] sm:$0xff] %vm487_vm9, %v837_v13 }
 0x275   : > { %883 = vst.msk [vmem:[#allocation2 + $0xf] sm:$0xfe] %vm516_vm10, %v865_v14 }
 0x27a   : > { %v817_v15 = vpop.permute.xlu1 %816 }
 0x27b   : > { %831 = vst.msk [vmem:[#allocation2 + $0x31] sm:$0x7f] %vm458_vm8, %v817_v15  ;;  %v867_v17 = vpop.permute.xlu0 %866 }
 0x27c   : > { %859 = vst.msk [vmem:[#allocation2 + $0x30] sm:$0xff] %vm487_vm9, %v845_v58  ;;  %v890_v21 = vld [vmem:[#allocation2 + $0x10] sm:$0xff] }
 0x27d   : > { %887 = vst.msk [vmem:[#allocation2 + $0x2f] sm:$0xfe] %vm516_vm10, %v873_v9 }
 0x282   : > { %v755_v63 = vpop.permute.xlu1 %754 }
 0x283   : > { %771 = vst.msk [vmem:[#allocation2 + $0x38] sm:$0xff] %vm395_vm5, %v755_v63 }
 0x284   : > { %803 = vst.msk [vmem:[#allocation2 + $0x37] sm:$0xfe] %vm428_vm7, %v787_v62  ;;  %v894_v18 = vld [vmem:[#allocation2 + $0x30] sm:$0xff] }
 0x28a   : > { %v839_v16 = vpop.permute.xlu1 %838 }
 0x28b   : > { %856 = vst.msk [vmem:[#allocation2 + $0x18] sm:$0xff] %vm487_vm9, %v839_v16  ;;  %v895_v19 = vld [vmem:[#allocation2 + $0x38] sm:$0xff] }
 0x28c   : > { %884 = vst.msk [vmem:[#allocation2 + $0x17] sm:$0xfe] %vm516_vm10, %v867_v17  ;;  %v899_v20 = vpack.c.bf16 %v895_v19, %v894_v18 }
 0x28e   : > { %1146 = vmatmul.msk.bf16.gmra.mxu3 %vm254_vm0, %v899_v20 }
 0x293   : > { %v891_v22 = vld [vmem:[#allocation2 + $0x18] sm:$0xff] }
 0x294   : > { %v897_v23 = vpack.c.bf16 %v891_v22, %v890_v21 }
 0x296   : > { %1144 = vmatmul.msk.bf16.gmra.mxu1 %vm254_vm0, %v897_v23 }
 0x2c5   : > { %v964_v25 = vpop.f32.mrf.mxu1 }
 0x2c6   : > { %v965_v26 = vadd.f32 %v1231_v24, %v964_v25 }
 0x2c8   : > { %v984_v27 = vadd.f32 %v965_v26, %v1471_v0 }
 0x2ca   : > { %v992_v29 = vmax.f32 %v984_v27, 0.0 }
 0x2cc   : > { %1001 = vst.msk [vmem:[%s1935_s9] sm:$0xff] %vm1000_vm11, %v992_v29 }
 0x2cd   : > { %v966_v30 = vpop.f32.mrf.mxu1 }
 0x2ce   : > { %v967_v31 = vadd.f32 %v1231_v24, %v966_v30 }
 0x2d0   : > { %v985_v32 = vadd.f32 %v967_v31, %v1480_v1 }
 0x2d2   : > { %v993_v33 = vmax.f32 %v985_v32, 0.0 }
 0x2d4   : > { %1002 = vst.msk [vmem:[%s1935_s9 + $0x8] sm:$0xff] %vm1000_vm11, %v993_v33 }
 0x2f6   : > { %v974_v34 = vpop.f32.mrf.mxu3 }
 0x2f7   : > { %v975_v0 = vadd.f32 %v1231_v24, %v974_v34 }
 0x2f9   : > { %v988_v35 = vadd.f32 %v975_v0, %v1504_v3 }
 0x2fb   : > { %v996_v36 = vmax.f32 %v988_v35, 0.0 }
 0x2fd   : > { %1005 = vst.msk [vmem:[%s1935_s9 + $0x20] sm:$0xff] %vm1000_vm11, %v996_v36 }
 0x2fe   : > { %v976_v7 = vpop.f32.mrf.mxu3 }
 0x2ff   : > { %v977_v37 = vadd.f32 %v1231_v24, %v976_v7 }
 0x301   : > { %v989_v38 = vadd.f32 %v977_v37, %v1522_v5 }
 0x303   : > { %v997_v39 = vmax.f32 %v989_v38, 0.0 }
 0x305   : > { %1006 = vst.msk [vmem:[%s1935_s9 + $0x28] sm:$0xff] %vm1000_vm11, %v997_v39 }
 0x311   : > { %v979_v1 = vpop.f32.mrf.mxu3 }
 0x312   : > { %v980_v40 = vadd.f32 %v1231_v24, %v979_v1 }
 0x313   : > { %v969_v41 = vpop.f32.mrf.mxu1 }
 0x314   : > { %v990_v42 = vadd.f32 %v980_v40, %v1537_v6  ;;  %v970_v43 = vadd.f32 %v1231_v24, %v969_v41 }
 0x316   : > { %v998_v3 = vmax.f32 %v990_v42, 0.0  ;;  %v986_v44 = vadd.f32 %v970_v43, %v1495_v2 }
 0x318   : > { %1007 = vst.msk [vmem:[%s1935_s9 + $0x30] sm:$0xff] %vm1000_vm11, %v998_v3  ;;  %v994_v45 = vmax.f32 %v986_v44, 0.0 }
 0x319   : > { %v981_v5 = vpop.f32.mrf.mxu3 }
 0x31a   : > { %1003 = vst.msk [vmem:[%s1935_s9 + $0x10] sm:$0xff] %vm1000_vm11, %v994_v45  ;;  %v982_v46 = vadd.f32 %v1231_v24, %v981_v5 }
 0x31b   : > { %v971_v6 = vpop.f32.mrf.mxu1 }
 0x31c   : > { %v991_v47 = vadd.f32 %v982_v46, %v1653_v28  ;;  %v972_v2 = vadd.f32 %v1231_v24, %v971_v6 }
 0x31e   : > { %v999_v48 = vmax.f32 %v991_v47, 0.0  ;;  %v987_v49 = vadd.f32 %v972_v2, %v1507_v4 }
 0x320   : > { %1008 = vst.msk [vmem:[%s1935_s9 + $0x38] sm:$0xff] %vm1000_vm11, %v999_v48  ;;  %v995_v50 = vmax.f32 %v987_v49, 0.0 }
 0x322   : > { %1004 = vst.msk [vmem:[%s1935_s9 + $0x18] sm:$0xff] %vm1000_vm11, %v995_v50 }
 0x323   : > { %1289 = shalt.err (!%p1286_p4)
}
 0x324   : > { %s1341_s12 = smov 128  }
 0x325   : > { %1174 = dma.vmem_to_hbm [thread:$0]  (%p1422_p11), %s1023_s17, 1024, %s1025_s22, %s1010_s26, %s1341_s12, %s1341_s12, %s1333_s15  }
 0x326 PF: > { %s1039_s9 = sand.u32 1, %s1316_s18   ;;  %p2006_p7 = scmp.ge.s32.totalorder %s1328_s21, 2 }
 0x327   : > { %s1040_s14 = scalar_lea.sflag [#allocation5], %s1039_s9 }
 0x328   : > { %p1181_p5 = pnand %p2006_p7, %p1426_p12 }
 0x32a   : > { %p1182_p8 = pneg %p1181_p5 }
 0x32c   : > { %1311 = dma.done.wait (%p1182_p8), %s1040_s14, 1024  }
 0x32d   : > { %1313 = vsyncadd (%p1182_p8), %s1040_s14, 4294966272  ;;  %p18_p10 = scmp.ge.s32.totalorder %s1397_s24, 4   ;;  %s2007_s18 = smov %s1320_s19 }
 0x32e   : > { %s2008_s19 = smov %s1324_s20  ;;  %s2009_s20 = smov %s1409_s27 }
 0x32f   : > { %s2010_s21 = smov %s1397_s24  ;;  %20 = sbr.rel (!%p18_p10) target bundleno = 5 (0x5), region = 86 }
 0x334   :  { %1046 = vsyncpa [#allocation4], 1 }
 0x335   :  { %1048 = vsyncpa [#allocation4 + $0x1], 1 }
 0x336   :  { %1049 = vsyncpa [#allocation5], 1 }
 0x337   :  { %1051 = vsyncpa [#allocation5 + $0x1], 1 }

</bundles_post_ra>
